<compile_context>
chip_gen: v7x
topology: tpu7x:2x2x1
jax: 0.10.0
libtpu: 0.0.40
codegen_flags: <defaults>
</compile_context>

<pallas_src>
import jax
import jax.numpy as jnp
import numpy as np
from jax.experimental import pallas as pl
from jax.experimental.pallas import tpu as pltpu


# -----------------------------------------------------------------------------
# Fused Pallas kernel: trunk (conv->relu->pool x block_count) + stacked heads
# -----------------------------------------------------------------------------
def _make_fused_kernel(block_count):
    """Build the fused trunk+heads kernel for a fixed (static) block count."""

    def kernel(x_ref, *refs):
        # refs = (w_0, b_0, ..., w_{n-1}, b_{n-1}, head_w, head_b, o_ref)
        o_ref = refs[-1]
        head_w_ref = refs[-3]            # (L_f, C_f, head_count*classes)
        head_b_ref = refs[-2]            # (1, head_count*classes)
        block_refs = refs[:2 * block_count]

        x = x_ref[0].astype(jnp.float32)                         # (L, Cin) channels-last

        # ---- trunk: Conv1d(k=3, pad=1) -> ReLU -> AvgPool1d(2), fully unrolled ----
        for blk in range(block_count):
            w_ref = block_refs[2 * blk]                          # (3, Cin, Cout)
            b_ref = block_refs[2 * blk + 1]                      # (1, Cout)
            L, cin = x.shape
            cout = w_ref.shape[2]

            # In-kernel halo for SAME padding (stays in VMEM, no host-side jnp.pad).
            zero_row = jnp.zeros((1, cin), jnp.float32)
            xp = jnp.concatenate([zero_row, x, zero_row], axis=0)   # (L+2, Cin)

            acc = jnp.zeros((L, cout), jnp.float32)
            for k in range(3):                                   # conv = 3 shifted matmuls
                tap = xp[k:k + L, :]                             # (L, Cin)   static slice
                w_k = w_ref[k]                                   # (Cin, Cout) static index
                if cin == 1:
                    # Degenerate K=1 contraction: keep it on the VPU (outer product).
                    acc = acc + tap * w_k
                else:
                    acc = acc + jnp.dot(tap, w_k,
                                        preferred_element_type=jnp.float32)
            acc = jnp.maximum(acc + b_ref[...], 0.0)             # bias + ReLU
            # AvgPool1d(kernel=2, stride=2): reshape-based pool over contiguous
            # sublane pairs (avoids stride-2 sublane gathers).  Truncate odd tails
            # exactly like torch AvgPool1d (floor).
            if L % 2:
                acc = acc[: (L // 2) * 2, :]
            x = acc.reshape(L // 2, 2, cout).sum(axis=1) * 0.5   # (L//2, Cout)

        # ---- heads: one stacked linear.  torch's channel-major flatten is folded
        # into the head weight layout, so logits = sum_l x[l,:] @ head_w[l]. ----
        l_f = x.shape[0]
        logits = jnp.dot(x[0:1, :], head_w_ref[0],
                         preferred_element_type=jnp.float32)     # (1, HC)
        for l in range(1, l_f):
            logits = logits + jnp.dot(x[l:l + 1, :], head_w_ref[l],
                                      preferred_element_type=jnp.float32)
        o_ref[0] = (logits + head_b_ref[...]).astype(o_ref.dtype)

    return kernel


# -----------------------------------------------------------------------------
# Wrapper: one pallas_call for the entire forward pass
# -----------------------------------------------------------------------------
def sca_cnn_forward(x_ncl, params):
    """Full SCA_CNN forward.  x_ncl: (B, Cin, L) in PyTorch NCL layout."""
    B, cin0, L0 = x_ncl.shape
    blocks = params["blocks"]
    heads = params["heads"]
    block_count = len(blocks)
    head_count = len(heads)

    c_f = blocks[-1][0].shape[2]                 # final channel count
    l_f = L0
    for _ in range(block_count):                 # final spatial length (floor halving)
        l_f //= 2
    classes = heads[0][0].shape[1]
    hc = head_count * classes

    # Channels-last input; for Cin=1 this transpose is effectively a free reshape.
    x_cl = jnp.transpose(x_ncl, (0, 2, 1))                       # (B, L, Cin)

    # Fold torch's channel-major flatten (f = c*L_f + l) into the head weights and
    # stack all heads into one matmul: head_w3[l, c, h].
    hw3 = jnp.concatenate(
        [hw.reshape(c_f, l_f, classes).transpose(1, 0, 2) for hw, _ in heads],
        axis=-1)                                                 # (L_f, C_f, HC)
    hb_all = jnp.concatenate([hb.reshape(1, classes) for _, hb in heads],
                             axis=-1)                            # (1, HC)

    operands = [x_cl]
    in_specs = [pl.BlockSpec((1, L0, cin0), lambda i: (i, 0, 0))]
    for (w, b) in blocks:
        operands += [w, b]
        in_specs += [pl.BlockSpec(w.shape, lambda i: (0, 0, 0)),
                     pl.BlockSpec(b.shape, lambda i: (0, 0))]
    operands += [hw3, hb_all]
    in_specs += [pl.BlockSpec(hw3.shape, lambda i: (0, 0, 0)),
                 pl.BlockSpec(hb_all.shape, lambda i: (0, 0))]

    # Advisory cost estimate so XLA can schedule around the custom call.
    flops = 0
    cur_l = L0
    for (w, _) in blocks:
        _, ci, co = w.shape
        flops += 2 * B * cur_l * 3 * ci * co
        cur_l //= 2
    flops += 2 * B * (c_f * l_f) * hc
    bytes_accessed = int(sum(int(np.prod(o.shape)) * 4 for o in operands) + B * hc * 4)

    out = pl.pallas_call(
        _make_fused_kernel(block_count),
        grid=(B,),
        in_specs=in_specs,
        out_specs=pl.BlockSpec((1, 1, hc), lambda i: (i, 0, 0)),
        out_shape=jax.ShapeDtypeStruct((B, 1, hc), jnp.float32),
        compiler_params=pltpu.CompilerParams(dimension_semantics=("parallel",)),
        cost_estimate=pl.CostEstimate(flops=int(flops), transcendentals=0,
                                      bytes_accessed=bytes_accessed),
    )(*operands)
    return out.reshape(B, head_count, classes)


# -----------------------------------------------------------------------------
# Deterministic parameter construction (synthetic weights, no checkpoints)
# -----------------------------------------------------------------------------
def make_params(key, in_channels, base_channels, block_count, feat_dim,
                output_classes, head_count):
    params = {"blocks": [], "heads": []}
    cin = in_channels
    cout = base_channels
    for _ in range(block_count):
        key, k1, k2 = jax.random.split(key, 3)
        w = jax.random.normal(k1, (3, cin, cout), jnp.float32) / np.sqrt(3 * cin)
        b = jax.random.normal(k2, (1, cout), jnp.float32) * 0.01
        params["blocks"].append((w, b))
        cin = cout
        cout *= 2
    for _ in range(head_count):
        key, k1, k2 = jax.random.split(key, 3)
        hw = jax.random.normal(k1, (feat_dim, output_classes), jnp.float32) / np.sqrt(feat_dim)
        hb = jax.random.normal(k2, (1, output_classes), jnp.float32) * 0.01
        params["heads"].append((hw, hb))
    return params


# -----------------------------------------------------------------------------
# Pure-JAX reference (torch semantics: NCL conv blocks, channel-major flatten)
# -----------------------------------------------------------------------------
def reference_forward(x_ncl, params):
    B = x_ncl.shape[0]
    x = jnp.transpose(x_ncl, (0, 2, 1))                          # (B, L, C)
    for (w, b) in params["blocks"]:
        L = x.shape[1]
        xp = jnp.pad(x, ((0, 0), (1, 1), (0, 0)))
        y = sum(jnp.einsum("blc,cd->bld", xp[:, k:k + L, :], w[k],
                           precision="highest") for k in range(3))
        y = jnp.maximum(y + b[None, :, :], 0.0)
        y = y[:, : (L // 2) * 2, :]
        x = (y[:, 0::2, :] + y[:, 1::2, :]) * 0.5
    x_flat = jnp.transpose(x, (0, 2, 1)).reshape(B, -1)          # torch x.view(B, -1)
    logits = [jnp.dot(x_flat, hw, precision="highest") + hb
              for (hw, hb) in params["heads"]]
    return jnp.stack(logits, axis=1)


# -----------------------------------------------------------------------------
if __name__ == "__main__":
    # Small shapes consistent with the module defaults (scaled down):
    # input_shape=(1, 64), base_channels=8, block_count=3, classes=16, heads=2.
    B = 2
    IN_CH, L = 1, 64
    BASE_CH = 8
    BLOCKS = 3
    CLASSES = 16
    HEADS = 2

    # channels: 1 -> 8 -> 16 -> 32 ; length: 64 -> 32 -> 16 -> 8  =>  F = 32 * 8
    FEAT = (BASE_CH * 2 ** (BLOCKS - 1)) * (L // (2 ** BLOCKS))

    key = jax.random.PRNGKey(0)
    kx, kp = jax.random.split(key)
    x = jax.random.normal(kx, (B, IN_CH, L), jnp.float32)        # PyTorch NCL layout
    params = make_params(kp, IN_CH, BASE_CH, BLOCKS, FEAT, CLASSES, HEADS)

    logits = jax.block_until_ready(sca_cnn_forward(x, params))
    assert logits.shape == (B, HEADS, CLASSES), logits.shape

    ref = jax.block_until_ready(reference_forward(x, params))
    np.testing.assert_allclose(np.asarray(logits), np.asarray(ref),
                               rtol=5e-4, atol=5e-4)

    # TODO(synk): noise_conditional=True branch (noise embedding + concat) is not
    # implemented; the default configuration (noise_conditional=False) is covered.
    print("KERNEL_OK")
</pallas_src>

<mosaic_0001>
module attributes {stable_mosaic.version = 11 : i64} {
  func.func @kernel(%arg0: i32, %arg1: memref<1x64x1xf32, #tpu.memory_space<vmem>>, %arg2: memref<3x1x8xf32, #tpu.memory_space<vmem>>, %arg3: memref<1x8xf32, #tpu.memory_space<vmem>>, %arg4: memref<3x8x16xf32, #tpu.memory_space<vmem>>, %arg5: memref<1x16xf32, #tpu.memory_space<vmem>>, %arg6: memref<3x16x32xf32, #tpu.memory_space<vmem>>, %arg7: memref<1x32xf32, #tpu.memory_space<vmem>>, %arg8: memref<8x32x32xf32, #tpu.memory_space<vmem>>, %arg9: memref<1x32xf32, #tpu.memory_space<vmem>>, %arg10: memref<1x1x32xf32, #tpu.memory_space<vmem>>) attributes {dimension_semantics = [#tpu.dimension_semantics<parallel>], iteration_bounds = array<i64: 2>, scalar_prefetch = 0 : i64, scratch_operands = 0 : i64, tpu.core_type = #tpu.core_type<tc>, window_params = [{transform_indices = @transform_0, window_bounds = array<i64: 1, 64, 1>}, {pipeline_mode = #tpu.pipeline_mode<synchronous>, transform_indices = @transform_1, window_bounds = array<i64: 3, 1, 8>}, {pipeline_mode = #tpu.pipeline_mode<synchronous>, transform_indices = @transform_2, window_bounds = array<i64: 1, 8>}, {pipeline_mode = #tpu.pipeline_mode<synchronous>, transform_indices = @transform_3, window_bounds = array<i64: 3, 8, 16>}, {pipeline_mode = #tpu.pipeline_mode<synchronous>, transform_indices = @transform_4, window_bounds = array<i64: 1, 16>}, {pipeline_mode = #tpu.pipeline_mode<synchronous>, transform_indices = @transform_5, window_bounds = array<i64: 3, 16, 32>}, {pipeline_mode = #tpu.pipeline_mode<synchronous>, transform_indices = @transform_6, window_bounds = array<i64: 1, 32>}, {pipeline_mode = #tpu.pipeline_mode<synchronous>, transform_indices = @transform_7, window_bounds = array<i64: 8, 32, 32>}, {pipeline_mode = #tpu.pipeline_mode<synchronous>, transform_indices = @transform_8, window_bounds = array<i64: 1, 32>}, {transform_indices = @transform_9, window_bounds = array<i64: 1, 1, 32>}]} {
    %c0 = arith.constant 0 : index
    %c0_0 = arith.constant 0 : index
    %c0_1 = arith.constant 0 : index
    %0 = vector.load %arg1[%c0, %c0_0, %c0_1] : memref<1x64x1xf32, #tpu.memory_space<vmem>>, vector<1x64x1xf32>
    %1 = vector.shape_cast %0 : vector<1x64x1xf32> to vector<64x1xf32>
    %cst = arith.constant 0.000000e+00 : f32
    %2 = vector.broadcast %cst : f32 to vector<1x1xf32>
    %3 = tpu.concatenate %2, %1, %2 in 0 : vector<1x1xf32>, vector<64x1xf32>, vector<1x1xf32> -> vector<66x1xf32>
    %cst_2 = arith.constant 0.000000e+00 : f32
    %4 = vector.broadcast %cst_2 : f32 to vector<64x8xf32>
    %5 = vector.extract_strided_slice %3 {offsets = [0, 0], sizes = [64, 1], strides = [1, 1]} : vector<66x1xf32> to vector<64x1xf32>
    %c0_3 = arith.constant 0 : index
    %c0_4 = arith.constant 0 : index
    %c0_5 = arith.constant 0 : index
    %6 = vector.load %arg2[%c0_3, %c0_4, %c0_5] : memref<3x1x8xf32, #tpu.memory_space<vmem>>, vector<1x1x8xf32>
    %7 = vector.shape_cast %6 : vector<1x1x8xf32> to vector<1x8xf32>
    %8 = vector.broadcast %5 : vector<64x1xf32> to vector<64x8xf32>
    %9 = vector.broadcast %7 : vector<1x8xf32> to vector<64x8xf32>
    %10 = arith.mulf %8, %9 : vector<64x8xf32>
    %11 = arith.addf %4, %10 : vector<64x8xf32>
    %12 = vector.extract_strided_slice %3 {offsets = [1, 0], sizes = [64, 1], strides = [1, 1]} : vector<66x1xf32> to vector<64x1xf32>
    %c1 = arith.constant 1 : index
    %c0_6 = arith.constant 0 : index
    %c0_7 = arith.constant 0 : index
    %13 = vector.load %arg2[%c1, %c0_6, %c0_7] : memref<3x1x8xf32, #tpu.memory_space<vmem>>, vector<1x1x8xf32>
    %14 = vector.shape_cast %13 : vector<1x1x8xf32> to vector<1x8xf32>
    %15 = vector.broadcast %12 : vector<64x1xf32> to vector<64x8xf32>
    %16 = vector.broadcast %14 : vector<1x8xf32> to vector<64x8xf32>
    %17 = arith.mulf %15, %16 : vector<64x8xf32>
    %18 = arith.addf %11, %17 : vector<64x8xf32>
    %19 = vector.extract_strided_slice %3 {offsets = [2, 0], sizes = [64, 1], strides = [1, 1]} : vector<66x1xf32> to vector<64x1xf32>
    %c2 = arith.constant 2 : index
    %c0_8 = arith.constant 0 : index
    %c0_9 = arith.constant 0 : index
    %20 = vector.load %arg2[%c2, %c0_8, %c0_9] : memref<3x1x8xf32, #tpu.memory_space<vmem>>, vector<1x1x8xf32>
    %21 = vector.shape_cast %20 : vector<1x1x8xf32> to vector<1x8xf32>
    %22 = vector.broadcast %19 : vector<64x1xf32> to vector<64x8xf32>
    %23 = vector.broadcast %21 : vector<1x8xf32> to vector<64x8xf32>
    %24 = arith.mulf %22, %23 : vector<64x8xf32>
    %25 = arith.addf %18, %24 : vector<64x8xf32>
    %c0_10 = arith.constant 0 : index
    %c0_11 = arith.constant 0 : index
    %26 = vector.load %arg3[%c0_10, %c0_11] : memref<1x8xf32, #tpu.memory_space<vmem>>, vector<1x8xf32>
    %27 = vector.broadcast %26 : vector<1x8xf32> to vector<64x8xf32>
    %28 = arith.addf %25, %27 : vector<64x8xf32>
    %cst_12 = arith.constant 0.000000e+00 : f32
    %29 = vector.broadcast %cst_12 : f32 to vector<64x8xf32>
    %30 = arith.maximumf %28, %29 : vector<64x8xf32>
    %31 = vector.shape_cast %30 : vector<64x8xf32> to vector<32x2x8xf32>
    %cst_13 = arith.constant dense<0.000000e+00> : vector<32x8xf32>
    %32 = vector.multi_reduction <add>, %31, %cst_13 [1] : vector<32x2x8xf32> to vector<32x8xf32>
    %cst_14 = arith.constant 5.000000e-01 : f32
    %33 = vector.broadcast %cst_14 : f32 to vector<32x8xf32>
    %34 = arith.mulf %32, %33 : vector<32x8xf32>
    %cst_15 = arith.constant 0.000000e+00 : f32
    %35 = vector.broadcast %cst_15 : f32 to vector<1x8xf32>
    %36 = tpu.concatenate %35, %34, %35 in 0 : vector<1x8xf32>, vector<32x8xf32>, vector<1x8xf32> -> vector<34x8xf32>
    %cst_16 = arith.constant 0.000000e+00 : f32
    %37 = vector.broadcast %cst_16 : f32 to vector<32x16xf32>
    %38 = vector.extract_strided_slice %36 {offsets = [0, 0], sizes = [32, 8], strides = [1, 1]} : vector<34x8xf32> to vector<32x8xf32>
    %c0_17 = arith.constant 0 : index
    %c0_18 = arith.constant 0 : index
    %c0_19 = arith.constant 0 : index
    %39 = vector.load %arg4[%c0_17, %c0_18, %c0_19] : memref<3x8x16xf32, #tpu.memory_space<vmem>>, vector<1x8x16xf32>
    %40 = vector.shape_cast %39 : vector<1x8x16xf32> to vector<8x16xf32>
    %cst_20 = arith.constant dense<0.000000e+00> : vector<32x16xf32>
    %41 = tpu.matmul %38, %40, %cst_20 {dimension_numbers = #tpu.dot_dimension_numbers<[1], [0], [0], [1], [0, 0, 1, 1], [], []>} : vector<32x8xf32>, vector<8x16xf32>, vector<32x16xf32> -> vector<32x16xf32>
    %42 = arith.addf %37, %41 : vector<32x16xf32>
    %43 = vector.extract_strided_slice %36 {offsets = [1, 0], sizes = [32, 8], strides = [1, 1]} : vector<34x8xf32> to vector<32x8xf32>
    %c1_21 = arith.constant 1 : index
    %c0_22 = arith.constant 0 : index
    %c0_23 = arith.constant 0 : index
    %44 = vector.load %arg4[%c1_21, %c0_22, %c0_23] : memref<3x8x16xf32, #tpu.memory_space<vmem>>, vector<1x8x16xf32>
    %45 = vector.shape_cast %44 : vector<1x8x16xf32> to vector<8x16xf32>
    %cst_24 = arith.constant dense<0.000000e+00> : vector<32x16xf32>
    %46 = tpu.matmul %43, %45, %cst_24 {dimension_numbers = #tpu.dot_dimension_numbers<[1], [0], [0], [1], [0, 0, 1, 1], [], []>} : vector<32x8xf32>, vector<8x16xf32>, vector<32x16xf32> -> vector<32x16xf32>
    %47 = arith.addf %42, %46 : vector<32x16xf32>
    %48 = vector.extract_strided_slice %36 {offsets = [2, 0], sizes = [32, 8], strides = [1, 1]} : vector<34x8xf32> to vector<32x8xf32>
    %c2_25 = arith.constant 2 : index
    %c0_26 = arith.constant 0 : index
    %c0_27 = arith.constant 0 : index
    %49 = vector.load %arg4[%c2_25, %c0_26, %c0_27] : memref<3x8x16xf32, #tpu.memory_space<vmem>>, vector<1x8x16xf32>
    %50 = vector.shape_cast %49 : vector<1x8x16xf32> to vector<8x16xf32>
    %cst_28 = arith.constant dense<0.000000e+00> : vector<32x16xf32>
    %51 = tpu.matmul %48, %50, %cst_28 {dimension_numbers = #tpu.dot_dimension_numbers<[1], [0], [0], [1], [0, 0, 1, 1], [], []>} : vector<32x8xf32>, vector<8x16xf32>, vector<32x16xf32> -> vector<32x16xf32>
    %52 = arith.addf %47, %51 : vector<32x16xf32>
    %c0_29 = arith.constant 0 : index
    %c0_30 = arith.constant 0 : index
    %53 = vector.load %arg5[%c0_29, %c0_30] : memref<1x16xf32, #tpu.memory_space<vmem>>, vector<1x16xf32>
    %54 = vector.broadcast %53 : vector<1x16xf32> to vector<32x16xf32>
    %55 = arith.addf %52, %54 : vector<32x16xf32>
    %cst_31 = arith.constant 0.000000e+00 : f32
    %56 = vector.broadcast %cst_31 : f32 to vector<32x16xf32>
    %57 = arith.maximumf %55, %56 : vector<32x16xf32>
    %58 = vector.shape_cast %57 : vector<32x16xf32> to vector<16x2x16xf32>
    %cst_32 = arith.constant dense<0.000000e+00> : vector<16x16xf32>
    %59 = vector.multi_reduction <add>, %58, %cst_32 [1] : vector<16x2x16xf32> to vector<16x16xf32>
    %cst_33 = arith.constant 5.000000e-01 : f32
    %60 = vector.broadcast %cst_33 : f32 to vector<16x16xf32>
    %61 = arith.mulf %59, %60 : vector<16x16xf32>
    %cst_34 = arith.constant 0.000000e+00 : f32
    %62 = vector.broadcast %cst_34 : f32 to vector<1x16xf32>
    %63 = tpu.concatenate %62, %61, %62 in 0 : vector<1x16xf32>, vector<16x16xf32>, vector<1x16xf32> -> vector<18x16xf32>
    %cst_35 = arith.constant 0.000000e+00 : f32
    %64 = vector.broadcast %cst_35 : f32 to vector<16x32xf32>
    %65 = vector.extract_strided_slice %63 {offsets = [0, 0], sizes = [16, 16], strides = [1, 1]} : vector<18x16xf32> to vector<16x16xf32>
    %c0_36 = arith.constant 0 : index
    %c0_37 = arith.constant 0 : index
    %c0_38 = arith.constant 0 : index
    %66 = vector.load %arg6[%c0_36, %c0_37, %c0_38] : memref<3x16x32xf32, #tpu.memory_space<vmem>>, vector<1x16x32xf32>
    %67 = vector.shape_cast %66 : vector<1x16x32xf32> to vector<16x32xf32>
    %cst_39 = arith.constant dense<0.000000e+00> : vector<16x32xf32>
    %68 = tpu.matmul %65, %67, %cst_39 {dimension_numbers = #tpu.dot_dimension_numbers<[1], [0], [0], [1], [0, 0, 1, 1], [], []>} : vector<16x16xf32>, vector<16x32xf32>, vector<16x32xf32> -> vector<16x32xf32>
    %69 = arith.addf %64, %68 : vector<16x32xf32>
    %70 = vector.extract_strided_slice %63 {offsets = [1, 0], sizes = [16, 16], strides = [1, 1]} : vector<18x16xf32> to vector<16x16xf32>
    %c1_40 = arith.constant 1 : index
    %c0_41 = arith.constant 0 : index
    %c0_42 = arith.constant 0 : index
    %71 = vector.load %arg6[%c1_40, %c0_41, %c0_42] : memref<3x16x32xf32, #tpu.memory_space<vmem>>, vector<1x16x32xf32>
    %72 = vector.shape_cast %71 : vector<1x16x32xf32> to vector<16x32xf32>
    %cst_43 = arith.constant dense<0.000000e+00> : vector<16x32xf32>
    %73 = tpu.matmul %70, %72, %cst_43 {dimension_numbers = #tpu.dot_dimension_numbers<[1], [0], [0], [1], [0, 0, 1, 1], [], []>} : vector<16x16xf32>, vector<16x32xf32>, vector<16x32xf32> -> vector<16x32xf32>
    %74 = arith.addf %69, %73 : vector<16x32xf32>
    %75 = vector.extract_strided_slice %63 {offsets = [2, 0], sizes = [16, 16], strides = [1, 1]} : vector<18x16xf32> to vector<16x16xf32>
    %c2_44 = arith.constant 2 : index
    %c0_45 = arith.constant 0 : index
    %c0_46 = arith.constant 0 : index
    %76 = vector.load %arg6[%c2_44, %c0_45, %c0_46] : memref<3x16x32xf32, #tpu.memory_space<vmem>>, vector<1x16x32xf32>
    %77 = vector.shape_cast %76 : vector<1x16x32xf32> to vector<16x32xf32>
    %cst_47 = arith.constant dense<0.000000e+00> : vector<16x32xf32>
    %78 = tpu.matmul %75, %77, %cst_47 {dimension_numbers = #tpu.dot_dimension_numbers<[1], [0], [0], [1], [0, 0, 1, 1], [], []>} : vector<16x16xf32>, vector<16x32xf32>, vector<16x32xf32> -> vector<16x32xf32>
    %79 = arith.addf %74, %78 : vector<16x32xf32>
    %c0_48 = arith.constant 0 : index
    %c0_49 = arith.constant 0 : index
    %80 = vector.load %arg7[%c0_48, %c0_49] : memref<1x32xf32, #tpu.memory_space<vmem>>, vector<1x32xf32>
    %81 = vector.broadcast %80 : vector<1x32xf32> to vector<16x32xf32>
    %82 = arith.addf %79, %81 : vector<16x32xf32>
    %cst_50 = arith.constant 0.000000e+00 : f32
    %83 = vector.broadcast %cst_50 : f32 to vector<16x32xf32>
    %84 = arith.maximumf %82, %83 : vector<16x32xf32>
    %85 = vector.shape_cast %84 : vector<16x32xf32> to vector<8x2x32xf32>
    %cst_51 = arith.constant dense<0.000000e+00> : vector<8x32xf32>
    %86 = vector.multi_reduction <add>, %85, %cst_51 [1] : vector<8x2x32xf32> to vector<8x32xf32>
    %cst_52 = arith.constant 5.000000e-01 : f32
    %87 = vector.broadcast %cst_52 : f32 to vector<8x32xf32>
    %88 = arith.mulf %86, %87 : vector<8x32xf32>
    %89 = vector.extract_strided_slice %88 {offsets = [0, 0], sizes = [1, 32], strides = [1, 1]} : vector<8x32xf32> to vector<1x32xf32>
    %c0_53 = arith.constant 0 : index
    %c0_54 = arith.constant 0 : index
    %c0_55 = arith.constant 0 : index
    %90 = vector.load %arg8[%c0_53, %c0_54, %c0_55] : memref<8x32x32xf32, #tpu.memory_space<vmem>>, vector<1x32x32xf32>
    %91 = vector.shape_cast %90 : vector<1x32x32xf32> to vector<32x32xf32>
    %cst_56 = arith.constant dense<0.000000e+00> : vector<1x32xf32>
    %92 = tpu.matmul %89, %91, %cst_56 {dimension_numbers = #tpu.dot_dimension_numbers<[1], [0], [0], [1], [0, 0, 1, 1], [], []>} : vector<1x32xf32>, vector<32x32xf32>, vector<1x32xf32> -> vector<1x32xf32>
    %93 = vector.extract_strided_slice %88 {offsets = [1, 0], sizes = [1, 32], strides = [1, 1]} : vector<8x32xf32> to vector<1x32xf32>
    %c1_57 = arith.constant 1 : index
    %c0_58 = arith.constant 0 : index
    %c0_59 = arith.constant 0 : index
    %94 = vector.load %arg8[%c1_57, %c0_58, %c0_59] : memref<8x32x32xf32, #tpu.memory_space<vmem>>, vector<1x32x32xf32>
    %95 = vector.shape_cast %94 : vector<1x32x32xf32> to vector<32x32xf32>
    %cst_60 = arith.constant dense<0.000000e+00> : vector<1x32xf32>
    %96 = tpu.matmul %93, %95, %cst_60 {dimension_numbers = #tpu.dot_dimension_numbers<[1], [0], [0], [1], [0, 0, 1, 1], [], []>} : vector<1x32xf32>, vector<32x32xf32>, vector<1x32xf32> -> vector<1x32xf32>
    %97 = arith.addf %92, %96 : vector<1x32xf32>
    %98 = vector.extract_strided_slice %88 {offsets = [2, 0], sizes = [1, 32], strides = [1, 1]} : vector<8x32xf32> to vector<1x32xf32>
    %c2_61 = arith.constant 2 : index
    %c0_62 = arith.constant 0 : index
    %c0_63 = arith.constant 0 : index
    %99 = vector.load %arg8[%c2_61, %c0_62, %c0_63] : memref<8x32x32xf32, #tpu.memory_space<vmem>>, vector<1x32x32xf32>
    %100 = vector.shape_cast %99 : vector<1x32x32xf32> to vector<32x32xf32>
    %cst_64 = arith.constant dense<0.000000e+00> : vector<1x32xf32>
    %101 = tpu.matmul %98, %100, %cst_64 {dimension_numbers = #tpu.dot_dimension_numbers<[1], [0], [0], [1], [0, 0, 1, 1], [], []>} : vector<1x32xf32>, vector<32x32xf32>, vector<1x32xf32> -> vector<1x32xf32>
    %102 = arith.addf %97, %101 : vector<1x32xf32>
    %103 = vector.extract_strided_slice %88 {offsets = [3, 0], sizes = [1, 32], strides = [1, 1]} : vector<8x32xf32> to vector<1x32xf32>
    %c3 = arith.constant 3 : index
    %c0_65 = arith.constant 0 : index
    %c0_66 = arith.constant 0 : index
    %104 = vector.load %arg8[%c3, %c0_65, %c0_66] : memref<8x32x32xf32, #tpu.memory_space<vmem>>, vector<1x32x32xf32>
    %105 = vector.shape_cast %104 : vector<1x32x32xf32> to vector<32x32xf32>
    %cst_67 = arith.constant dense<0.000000e+00> : vector<1x32xf32>
    %106 = tpu.matmul %103, %105, %cst_67 {dimension_numbers = #tpu.dot_dimension_numbers<[1], [0], [0], [1], [0, 0, 1, 1], [], []>} : vector<1x32xf32>, vector<32x32xf32>, vector<1x32xf32> -> vector<1x32xf32>
    %107 = arith.addf %102, %106 : vector<1x32xf32>
    %108 = vector.extract_strided_slice %88 {offsets = [4, 0], sizes = [1, 32], strides = [1, 1]} : vector<8x32xf32> to vector<1x32xf32>
    %c4 = arith.constant 4 : index
    %c0_68 = arith.constant 0 : index
    %c0_69 = arith.constant 0 : index
    %109 = vector.load %arg8[%c4, %c0_68, %c0_69] : memref<8x32x32xf32, #tpu.memory_space<vmem>>, vector<1x32x32xf32>
    %110 = vector.shape_cast %109 : vector<1x32x32xf32> to vector<32x32xf32>
    %cst_70 = arith.constant dense<0.000000e+00> : vector<1x32xf32>
    %111 = tpu.matmul %108, %110, %cst_70 {dimension_numbers = #tpu.dot_dimension_numbers<[1], [0], [0], [1], [0, 0, 1, 1], [], []>} : vector<1x32xf32>, vector<32x32xf32>, vector<1x32xf32> -> vector<1x32xf32>
    %112 = arith.addf %107, %111 : vector<1x32xf32>
    %113 = vector.extract_strided_slice %88 {offsets = [5, 0], sizes = [1, 32], strides = [1, 1]} : vector<8x32xf32> to vector<1x32xf32>
    %c5 = arith.constant 5 : index
    %c0_71 = arith.constant 0 : index
    %c0_72 = arith.constant 0 : index
    %114 = vector.load %arg8[%c5, %c0_71, %c0_72] : memref<8x32x32xf32, #tpu.memory_space<vmem>>, vector<1x32x32xf32>
    %115 = vector.shape_cast %114 : vector<1x32x32xf32> to vector<32x32xf32>
    %cst_73 = arith.constant dense<0.000000e+00> : vector<1x32xf32>
    %116 = tpu.matmul %113, %115, %cst_73 {dimension_numbers = #tpu.dot_dimension_numbers<[1], [0], [0], [1], [0, 0, 1, 1], [], []>} : vector<1x32xf32>, vector<32x32xf32>, vector<1x32xf32> -> vector<1x32xf32>
    %117 = arith.addf %112, %116 : vector<1x32xf32>
    %118 = vector.extract_strided_slice %88 {offsets = [6, 0], sizes = [1, 32], strides = [1, 1]} : vector<8x32xf32> to vector<1x32xf32>
    %c6 = arith.constant 6 : index
    %c0_74 = arith.constant 0 : index
    %c0_75 = arith.constant 0 : index
    %119 = vector.load %arg8[%c6, %c0_74, %c0_75] : memref<8x32x32xf32, #tpu.memory_space<vmem>>, vector<1x32x32xf32>
    %120 = vector.shape_cast %119 : vector<1x32x32xf32> to vector<32x32xf32>
    %cst_76 = arith.constant dense<0.000000e+00> : vector<1x32xf32>
    %121 = tpu.matmul %118, %120, %cst_76 {dimension_numbers = #tpu.dot_dimension_numbers<[1], [0], [0], [1], [0, 0, 1, 1], [], []>} : vector<1x32xf32>, vector<32x32xf32>, vector<1x32xf32> -> vector<1x32xf32>
    %122 = arith.addf %117, %121 : vector<1x32xf32>
    %123 = vector.extract_strided_slice %88 {offsets = [7, 0], sizes = [1, 32], strides = [1, 1]} : vector<8x32xf32> to vector<1x32xf32>
    %c7 = arith.constant 7 : index
    %c0_77 = arith.constant 0 : index
    %c0_78 = arith.constant 0 : index
    %124 = vector.load %arg8[%c7, %c0_77, %c0_78] : memref<8x32x32xf32, #tpu.memory_space<vmem>>, vector<1x32x32xf32>
    %125 = vector.shape_cast %124 : vector<1x32x32xf32> to vector<32x32xf32>
    %cst_79 = arith.constant dense<0.000000e+00> : vector<1x32xf32>
    %126 = tpu.matmul %123, %125, %cst_79 {dimension_numbers = #tpu.dot_dimension_numbers<[1], [0], [0], [1], [0, 0, 1, 1], [], []>} : vector<1x32xf32>, vector<32x32xf32>, vector<1x32xf32> -> vector<1x32xf32>
    %127 = arith.addf %122, %126 : vector<1x32xf32>
    %c0_80 = arith.constant 0 : index
    %c0_81 = arith.constant 0 : index
    %128 = vector.load %arg9[%c0_80, %c0_81] : memref<1x32xf32, #tpu.memory_space<vmem>>, vector<1x32xf32>
    %129 = arith.addf %127, %128 : vector<1x32xf32>
    %c0_82 = arith.constant 0 : index
    %c0_83 = arith.constant 0 : index
    %c0_84 = arith.constant 0 : index
    %130 = vector.load %arg10[%c0_82, %c0_83, %c0_84] : memref<1x1x32xf32, #tpu.memory_space<vmem>>, vector<1x1x32xf32>
    %131 = vector.shape_cast %130 : vector<1x1x32xf32> to vector<1x32xf32>
    %132 = vector.shape_cast %129 : vector<1x32xf32> to vector<1x1x32xf32>
    tpu.vector_store %arg10[%c0_82, %c0_83, %c0_84], %132 {strides = array<i32>} : memref<1x1x32xf32, #tpu.memory_space<vmem>>, vector<1x1x32xf32>,
    return
  }
  func.func @transform_0(%arg0: i32) -> (i32, i32, i32) {
    %c0_i32 = arith.constant 0 : i32
    %c0_i32_0 = arith.constant 0 : i32
    %c0_i32_1 = arith.constant 0 : i32
    return %arg0, %c0_i32, %c0_i32_0 : i32, i32, i32
  }
  func.func @transform_1(%arg0: i32) -> (i32, i32, i32) {
    %c0_i32 = arith.constant 0 : i32
    %c0_i32_0 = arith.constant 0 : i32
    %c0_i32_1 = arith.constant 0 : i32
    %c0_i32_2 = arith.constant 0 : i32
    return %c0_i32, %c0_i32_0, %c0_i32_1 : i32, i32, i32
  }
  func.func @transform_2(%arg0: i32) -> (i32, i32) {
    %c0_i32 = arith.constant 0 : i32
    %c0_i32_0 = arith.constant 0 : i32
    %c0_i32_1 = arith.constant 0 : i32
    return %c0_i32, %c0_i32_0 : i32, i32
  }
  func.func @transform_3(%arg0: i32) -> (i32, i32, i32) {
    %c0_i32 = arith.constant 0 : i32
    %c0_i32_0 = arith.constant 0 : i32
    %c0_i32_1 = arith.constant 0 : i32
    %c0_i32_2 = arith.constant 0 : i32
    return %c0_i32, %c0_i32_0, %c0_i32_1 : i32, i32, i32
  }
  func.func @transform_4(%arg0: i32) -> (i32, i32) {
    %c0_i32 = arith.constant 0 : i32
    %c0_i32_0 = arith.constant 0 : i32
    %c0_i32_1 = arith.constant 0 : i32
    return %c0_i32, %c0_i32_0 : i32, i32
  }
  func.func @transform_5(%arg0: i32) -> (i32, i32, i32) {
    %c0_i32 = arith.constant 0 : i32
    %c0_i32_0 = arith.constant 0 : i32
    %c0_i32_1 = arith.constant 0 : i32
    %c0_i32_2 = arith.constant 0 : i32
    return %c0_i32, %c0_i32_0, %c0_i32_1 : i32, i32, i32
  }
  func.func @transform_6(%arg0: i32) -> (i32, i32) {
    %c0_i32 = arith.constant 0 : i32
    %c0_i32_0 = arith.constant 0 : i32
    %c0_i32_1 = arith.constant 0 : i32
    return %c0_i32, %c0_i32_0 : i32, i32
  }
  func.func @transform_7(%arg0: i32) -> (i32, i32, i32) {
    %c0_i32 = arith.constant 0 : i32
    %c0_i32_0 = arith.constant 0 : i32
    %c0_i32_1 = arith.constant 0 : i32
    %c0_i32_2 = arith.constant 0 : i32
    return %c0_i32, %c0_i32_0, %c0_i32_1 : i32, i32, i32
  }
  func.func @transform_8(%arg0: i32) -> (i32, i32) {
    %c0_i32 = arith.constant 0 : i32
    %c0_i32_0 = arith.constant 0 : i32
    %c0_i32_1 = arith.constant 0 : i32
    return %c0_i32, %c0_i32_0 : i32, i32
  }
  func.func @transform_9(%arg0: i32) -> (i32, i32, i32) {
    %c0_i32 = arith.constant 0 : i32
    %c0_i32_0 = arith.constant 0 : i32
    %c0_i32_1 = arith.constant 0 : i32
    return %arg0, %c0_i32, %c0_i32_0 : i32, i32, i32
  }
}

</mosaic_0001>

<bundles_post_ra>
// kernel: tpu_custom_call.1
= control target key start
LH: loop header
LB: loop body
LE: loop exit
PB: predicated region body
PF: predicated region fallthrough
CT: control target
= control target key end

     0   :  { %14 = vsyncpa [#allocation3], 0  ;;  %s3938_s0 = inlined_call_operand.vmem [shape: f32[2,64,1], index: 0, kind: input, shape index: {}]   ;;  %s3939_s1 = inlined_call_operand.vmem [shape: f32[3,1,8], index: 1, kind: input, shape index: {}]   ;;  %s3940_s2 = inlined_call_operand.vmem [shape: f32[1,8], index: 2, kind: input, shape index: {}]   ;;  %s3941_s3 = inlined_call_operand.vmem [shape: f32[3,8,16], index: 3, kind: input, shape index: {}]   ;;  %s3942_s4 = inlined_call_operand.vmem [shape: f32[1,16], index: 4, kind: input, shape index: {}]   ;;  %s3943_s5 = inlined_call_operand.vmem [shape: f32[3,16,32], index: 5, kind: input, shape index: {}]   ;;  %s3944_s6 = inlined_call_operand.vmem [shape: f32[1,32], index: 6, kind: input, shape index: {}]   ;;  %s3945_s7 = inlined_call_operand.hbm [shape: f32[8,32,32], index: 7, kind: input, shape index: {}]   ;;  %s3946_s8 = inlined_call_operand.vmem [shape: f32[1,32], index: 8, kind: input, shape index: {}]   ;;  %s3947_s9 = inlined_call_operand.hbm [shape: f32[2,1,32], index: 9, kind: output, shape index: {}]  }
   0x1   :  { %15 = vsyncpa [#allocation4], 0 }
   0x2   :  { %17 = vsyncpa [#allocation4 + $0x1], 0  ;;  %s3296_s30 = smov 0   ;;  %s3298_s10 = smov 0  }
   0x3   :  { %s3300_s11 = smov 0   ;;  %s3302_s12 = smov 0  }
   0x4 LB: > { %s3317_s13 = sadd.s32 4294967295, %s3235_s12   ;;  %s2756_s14 = sadd.s32 4294967294, %s3235_s12   ;;  %s3235_s12 = sphi %s3302_s12, %s3963_s12   ;;  %s3231_s11 = sphi %s3300_s11, %s3962_s11   ;;  %s3227_s10 = sphi %s3298_s10, %s3961_s10   ;;  %s3223_s30 = sphi %s3296_s30, %s3960_s30  }
   0x5   : > { %s3321_s15 = sadd.s32 1, %s3235_s12   ;;  %s224_s16 = sadd.s32 1, %s3231_s11 }
   0x6   : > { %s221_s17 = ssub.s32 %s3235_s12, %s3321_s15  ;;  %p234_p0 = scmp.ne.s32.totalorder %s3231_s11, %s3227_s10 }
   0x7   : > { %p222_p1 = scmp.eq.s32.totalorder %s221_s17, 0  ;;  %p235_p2 = scmp.eq.s32.totalorder %s3317_s13, 1 }
   0x8   : > { %p240_p3 = scmp.ne.s32.totalorder %s3227_s10, %s3223_s30  ;;  %p241_p4 = scmp.eq.s32.totalorder %s2756_s14, 1 }
   0x9   : > { %s3332_s18 = scalar_select %p222_p1, %s3231_s11, %s224_s16  }
   0xa   : > { %p3334_p5 = por %p235_p2, %p234_p0  ;;  %p3338_p6 = por %p241_p4, %p240_p3 }
   0xb   : > { %p2757_p7 = scmp.ge.s32.totalorder %s3235_s12, 1  ;;  %p248_p8 = scmp.lt.s32.totalorder %s3235_s12, 3 }
   0xc   : > { %s3951_s19 = scalar_select %p3334_p5, 1, 0 }
   0xd   : > { %s3952_s20 = scalar_select %p3338_p6, 1, 0 }
   0xe   : > { %p3948_p9 = scmp.eq.s32.totalorder %s3317_s13, 0  ;;  %p3345_p10 = pnand %p2757_p7, %p248_p8 }
   0xf   : > { %s3237_s22 = smov [#allocation2]   ;;  %s3141_s27 = scalar_lea.hbm %s3945_s7, 4096 }
  0x10   : > { %s3953_s21 = scalar_select %p3345_p10, 1, 0 }
  0x11   : > { %s278_s23 = sshll.u32 %s3237_s22, 4  ;;  %p3088_p11 = pneg %p3345_p10  ;;  %s279_s23 = int_to_ptr.vmem [resolvable:$true] %s278_s23 }
  0x12   : > { %p3142_p13 = scmp.ne.s32.totalorder %s3945_s7, %s3141_s27  ;;  %p3148_p3 = scmp.lt.u32.totalorder %s3141_s27, %s3945_s7 }
  0x13   : > { %p3353_p12 = pnand %p3948_p9, %p3088_p11 }
  0x15   : > { %p3143_p0 = pneg %p3353_p12 }
  0x17   : > { %p3144_p1 = pnand %p3143_p0, %p3142_p13 }
  0x19   : > { %p3145_p2 = pneg %p3144_p1 }
  0x1b   : > { %p3150_p4 = pnand %p3148_p3, %p3145_p2 }
  0x1d   : > { %3153 = shalt.err (!%p3150_p4)
}
  0x1e   : > { %s3154_s17 = scalar_lea.vmem %s279_s23, 4096  ;;  %p3162_p9 = scmp.lt.s32.totalorder %s279_s23, %s279_s23 }
  0x1f   : > { %p3155_p7 = scmp.ne.s32.totalorder %s279_s23, %s3154_s17  ;;  %p3163_p6 = scmp.lt.s32.totalorder %s3154_s17, %s3154_s17 }
  0x21   : > { %p3157_p8 = pnand %p3155_p7, %p3143_p0  ;;  %p3164_p5 = por %p3163_p6, %p3162_p9 }
  0x23   : > { %p3158_p11 = pneg %p3157_p8 }
  0x25   : > { %p3165_p10 = pnand %p3164_p5, %p3158_p11 }
  0x27   : > { %3168 = shalt.err (!%p3165_p10)
}
  0x28   : > { %s3238_s22 = smov 128   ;;  %s3239_s25 = smov 8  }
  0x29   : > { %3091 = dma.hbm_to_vmem [thread:$0]  (!%p3353_p12), %s3945_s7, 4096, %s279_s23, [#allocation3], %s3238_s22, %s3238_s22, %s3239_s25  }
  0x2a   : > { %p3955_p13 = scmp.ne.s32.totalorder %s3953_s21, 0 }
  0x2b   : > { %p3956_p1 = scmp.eq.s32.totalorder (!%p3955_p13), %s3317_s13, 0 }
  0x2c   : > { %305 = sbr.rel (%p3955_p13) target bundleno = 1088 (0x440), region = 56 }
  0x33   : > { %3214 = dma.done.wait (%p3956_p1), [#allocation3], 4096   ;;  %p3957_p0 = pmov %p3956_p1 }
  0x34   : > { %p340_p5 = scmp.lt.s32.totalorder %s3317_s13, 1  ;;  %v3240_v0 = vmov 0   ;;  %vm361_vm0 = vcmask 1040384   ;;  %v2770_v26 = vld [vmem:[%s3941_s3 + $0x8] sm:$0xff]  ;;  %v3399_v27 = vld [vmem:[%s3941_s3] sm:$0xff]  ;;  %v597_v30 = vlaneseq  ;;  %vm468_vm1 = vcmask 1046528  }
  0x35   : > { %3216 = vsyncadd (%p3957_p0), [#allocation3], 4294963200  ;;  %3140 = vset.pattern.permute.xlu1 %v3240_v0  ;;  %3139 = vset.pattern.permute.xlu0 %v3240_v0  ;;  %v3241_v28 = vmov 1983009808   ;;  %v3405_v32 = vld [vmem:[%s3939_s1 + $0x1] ss:$0 sm:$0xff] }
  0x36   : > { %s341_s24 = scalar_select %p340_p5, %s3317_s13, 1  ;;  %2875 = vmatprep.subr.mxu0 %v2770_v26  ;;  %3068 = vmatprep.subr.mxu1 %v2770_v26  ;;  %v595_v29 = vunpack.c.l.s4 %v3241_v28  ;;  %v3410_v33 = vld [vmem:[%s3939_s1 + $0x2] ss:$0 sm:$0xff]  ;;  %v598_v36 = vshrl.u32 %v597_v30, 7  ;;  %v3415_v37 = vld [vmem:[%s3939_s1] ss:$0 sm:$0xff] }
  0x37   : > { %2876 = vmatpush3.msra.mxu0 %v2770_v26  ;;  %3069 = vmatpush3.msra.mxu1 %v2770_v26  ;;  %vm528_vm2 = vcmask 1045504   ;;  %vm761_vm3 = vcmask 58368   ;;  %vm1050_vm4 = vcmask 1042434   ;;  %vm1052_vm5 = vcmask 1043459   ;;  %s338_s28 = sand.u32 1, %s3227_s10   ;;  %s2804_s29 = sshll.u32 %s3317_s13, 4 }
  0x38   : > { %s2807_s27 = sshll.u32 %s341_s24, 6  ;;  %2883 = vmatprep.subr.mxu0 %v3399_v27  ;;  %v596_v35 = vunpack.c.0.s8 %v595_v29  ;;  %vm1062_vm6 = vcmask 1041409   ;;  %vm1054_vm7 = vcmask 1044484   ;;  %vm1056_vm8 = vcmask 1045509   ;;  %s339_s14 = scalar_lea.vmem [#allocation5], %s338_s28 }
  0x39   : > { %s344_s23 = scalar_lea.vmem %s3938_s0, %s2807_s27  ;;  %vm1058_vm9 = vcmask 1046534   ;;  %vm1060_vm10 = vcmask 1047559   ;;  %vm1102_vm11 = vcmask 64512   ;;  %vm1500_vm12 = vcmask 123904   ;;  %s3896_s17 = scalar_lea.hbm %s3947_s9, %s2804_s29 }
  0x3a   : > { %v347_v1 = vld [vmem:[%s344_s23 + $0x10] sm:$0xff]  ;;  %v348_v2 = vld [vmem:[%s344_s23 + $0x18] sm:$0xff]  ;;  %v345_v3 = vld [vmem:[%s344_s23] sm:$0xff]  ;;  %v3423_v43 = vsub.s32 %v596_v35, %v598_v36  ;;  %vm1674_vm13 = vcmask 130048   ;;  %vm3243_vm14 = vmmov 0   ;;  %vm1977_vm15 = vcmask 254976  }
  0x3b   : > { %v365_v4 = vrot.slane %v347_v1, 7  ;;  %v367_v5 = vrot.slane %v348_v2, 7  ;;  %v346_v6 = vld [vmem:[%s344_s23 + $0x8] sm:$0xff]  ;;  %v362_v7 = vrot.slane %v345_v3, 7  ;;  %v349_v8 = vld [vmem:[%s344_s23 + $0x20] sm:$0xff]  ;;  %v351_v17 = vld [vmem:[%s344_s23 + $0x30] sm:$0xff] }
  0x3c   : > { %v363_v9 = vrot.slane %v346_v6, 7  ;;  %v369_v10 = vrot.slane %v349_v8, 7  ;;  %v350_v11 = vld [vmem:[%s344_s23 + $0x28] sm:$0xff]  ;;  %v352_v18 = vld [vmem:[%s344_s23 + $0x38] sm:$0xff]  ;;  %v373_v20 = vrot.slane %v351_v17, 7  ;;  %s2689_s23 = sshll.u32 %s339_s14, 4  ;;  %s3898_s23 = int_to_ptr.vmem [resolvable:$true] %s2689_s23 }
  0x3d   : > { %v368_v12 = vsel %vm361_vm0, %v365_v4, %v367_v5  ;;  %v371_v15 = vrot.slane %v350_v11, 7  ;;  %v375_v21 = vrot.slane %v352_v18, 7  ;;  %v379_v22 = vsel %vm361_vm0, 0.0, %v362_v7  ;;  %s2677_s22 = scalar_lea.sflag [#allocation4], %s338_s28  ;;  %s3169_s25 = scalar_lea.vmem %s3898_s23, 16 }
  0x3e   : > { %396 = vperm.xlu1 %3140, %v368_v12   ;;  %v364_v13 = vsel %vm361_vm0, %v362_v7, %v363_v9  ;;  %v370_v14 = vsel %vm361_vm0, %v367_v5, %v369_v10  ;;  %v366_v16 = vsel %vm361_vm0, %v363_v9, %v365_v4  ;;  %v3444_v5 = vld [vmem:[%s3940_s2] ss:$0 sm:$0xff]  ;;  %p3170_p6 = scmp.ne.s32.totalorder %s3898_s23, %s3169_s25  ;;  %p3958_p9 = scmp.ne.s32.totalorder %s3951_s19, 0 }
  0x3f   : > { %388 = vperm.xlu0 %3139, %v364_v13   ;;  %v372_v19 = vsel %vm361_vm0, %v369_v10, %v371_v15  ;;  %v376_v23 = vsel %vm361_vm0, %v373_v20, %v375_v21  ;;  %v374_v24 = vsel %vm361_vm0, %v371_v15, %v373_v20  ;;  %v380_v25 = vsel %vm361_vm0, %v375_v21, 0.0  ;;  %s3245_s13 = smov [#allocation5]  }
  0x40   : > { %p3171_p10 = pnand %p3170_p6, %p3958_p9  ;;  %s3173_s26 = sshll.u32 %s3245_s13, 4  ;;  %s3174_s26 = int_to_ptr.vmem [resolvable:$false] %s3173_s26 }
  0x41   : > { %s3175_s24 = scalar_lea.vmem %s3174_s26, 32  ;;  %p3176_p2 = scmp.lt.s32.totalorder %s3898_s23, %s3174_s26 }
  0x42   : > { %400 = vperm.xlu1 %3140, %v370_v14   ;;  %p3172_p12 = pneg %p3171_p10  ;;  %p3177_p3 = scmp.lt.s32.totalorder %s3175_s24, %s3169_s25 }
  0x43   : > { %392 = vperm.xlu0 %3139, %v366_v16  }
  0x44   : > { %p3178_p4 = por %p3177_p3, %p3176_p2 }
  0x46   : > { %404 = vperm.xlu1 %3140, %v372_v19   ;;  %p3179_p7 = pnand %p3178_p4, %p3172_p12 }
  0x47   : > { %384 = vperm.xlu0 %3139, %v379_v22  }
  0x4a   : > { %412 = vperm.xlu1 %3140, %v376_v23  }
  0x4b   : > { %408 = vperm.xlu0 %3139, %v374_v24  }
  0x4f   : > { %441 = vperm.xlu0 %3139, %v380_v25  }
  0xbd   : > { %v397_v31 = vpop.permute.xlu1 %396 }
  0xbe   : > { %v389_v34 = vpop.permute.xlu0 %388  ;;  %v453_v38 = vmul.f32 %v3405_v32, %v397_v31  ;;  %v513_v39 = vmul.f32 %v3410_v33, %v397_v31  ;;  %v424_v47 = vmul.f32 %v3415_v37, %v397_v31 }
  0xbf   : > { %v451_v40 = vmul.f32 %v3405_v32, %v389_v34  ;;  %v3421_v41 = vmul.f32 %v3410_v33, %v389_v34  ;;  %v422_v48 = vmul.f32 %v3415_v37, %v389_v34 }
  0xc0   : > { %v474_v51 = vrot.slane %v453_v38, 1  ;;  %v534_v52 = vrot.slane %v513_v39, 2 }
  0xc1   : > { %v401_v42 = vpop.permute.xlu1 %400  ;;  %v470_v55 = vrot.slane %v451_v40, 1  ;;  %v530_v56 = vrot.slane %v3421_v41, 2 }
  0xc2   : > { %v454_v44 = vmul.f32 %v3405_v32, %v401_v42  ;;  %v514_v45 = vmul.f32 %v3410_v33, %v401_v42  ;;  %v393_v46 = vpop.permute.xlu0 %392  ;;  %v425_v60 = vmul.f32 %v3415_v37, %v401_v42 }
  0xc3   : > { %v452_v49 = vmul.f32 %v3405_v32, %v393_v46  ;;  %v512_v50 = vmul.f32 %v3410_v33, %v393_v46  ;;  %v423_v62 = vmul.f32 %v3415_v37, %v393_v46 }
  0xc4   : > { %v476_v53 = vrot.slane %v454_v44, 1  ;;  %v536_v54 = vrot.slane %v514_v45, 2 }
  0xc5   : > { %v472_v57 = vrot.slane %v452_v49, 1  ;;  %v532_v58 = vrot.slane %v512_v50, 2  ;;  %v405_v59 = vpop.permute.xlu1 %404 }
  0xc6   : > { %v477_v61 = vsel %vm468_vm1, %v474_v51, %v476_v53  ;;  %v3436_v63 = vmul.f32 %v3405_v32, %v405_v59  ;;  %v385_v0 = vpop.permute.xlu0 %384  ;;  %v537_v2 = vsel %vm528_vm2, %v534_v52, %v536_v54  ;;  %v3450_v12 = vmul.f32 %v3410_v33, %v405_v59 }
  0xc7   : > { %v497_v1 = vadd.f32 %v477_v61, %v424_v47  ;;  %v473_v3 = vsel %vm468_vm1, %v470_v55, %v472_v57  ;;  %v475_v4 = vsel %vm468_vm1, %v472_v57, %v474_v51  ;;  %v533_v8 = vsel %vm528_vm2, %v530_v56, %v532_v58 }
  0xc8   : > { %v495_v6 = vadd.f32 %v473_v3, %v422_v48  ;;  %v496_v7 = vadd.f32 %v475_v4, %v423_v62  ;;  %v478_v9 = vrot.slane %v3436_v63, 1  ;;  %v535_v11 = vsel %vm528_vm2, %v532_v58, %v534_v52 }
  0xc9   : > { %v557_v10 = vadd.f32 %v537_v2, %v497_v1  ;;  %v450_v13 = vmul.f32 %v3405_v32, %v385_v0  ;;  %v510_v17 = vmul.f32 %v3410_v33, %v385_v0  ;;  %v3457_v18 = vpop.permute.xlu1 %412  ;;  %v538_v21 = vrot.slane %v3450_v12, 2 }
  0xca   : > { %v555_v14 = vadd.f32 %v533_v8, %v495_v6  ;;  %v556_v15 = vadd.f32 %v535_v11, %v496_v7  ;;  %v479_v16 = vsel %vm468_vm1, %v476_v53, %v478_v9  ;;  %v3464_v25 = vmul.f32 %v3415_v37, %v405_v59 }
  0xcb   : > { %v572_v19 = vadd.f32 %v3444_v5, %v557_v10  ;;  %v498_v20 = vadd.f32 %v479_v16, %v425_v60  ;;  %v469_v22 = vrot.slane %v450_v13, 1  ;;  %v421_v26 = vmul.f32 %v3415_v37, %v385_v0 }
  0xcc   : > { %v570_v23 = vadd.f32 %v3444_v5, %v555_v14  ;;  %v571_v24 = vadd.f32 %v3444_v5, %v556_v15  ;;  %v529_v30 = vrot.slane %v510_v17, 2  ;;  %v3470_v31 = vmul.f32 %v3415_v37, %v3457_v18 }
  0xcd   : > { %v580_v28 = vmax.f32 %v572_v19, 0.0  ;;  %v471_v29 = vsel %vm468_vm1, %v469_v22, %v470_v55  ;;  %v539_v36 = vsel %vm528_vm2, %v536_v54, %v538_v21  ;;  %v3477_v38 = vmul.f32 %v3405_v32, %v3457_v18 }
  0xce   : > { %v578_v34 = vmax.f32 %v570_v23, 0.0  ;;  %v579_v35 = vmax.f32 %v571_v24, 0.0  ;;  %v558_v41 = vadd.f32 %v539_v36, %v498_v20  ;;  %v3480_v42 = vadd.f32 %v471_v29, %v421_v26 }
  0xcf   : > { %v644_v39 = vcombine.high %v580_v28, %v580_v28  ;;  %v651_v40 = vrot.slane %v580_v28, %v3423_v43  ;;  %v3489_v51 = vsel %vm528_vm2, %v529_v30, %v530_v56  ;;  %v482_v0 = vrot.slane %v3477_v38, 1 }
  0xd0   : > { %v610_v44 = vcombine.high %v578_v34, %v578_v34  ;;  %v617_v45 = vrot.slane %v578_v34, %v3423_v43  ;;  %v627_v46 = vcombine.high %v579_v35, %v579_v35  ;;  %v634_v47 = vrot.slane %v579_v35, %v3423_v43 }
  0xd1   : > { %v3485_v48 = vrot.slane %v644_v39, %v3423_v43  ;;  %v659_v49 = vcombine.high %v651_v40, %v651_v40  ;;  %v846_v50 = vsel %vm761_vm3, %v651_v40, 0.0  ;;  %v573_v56 = vadd.f32 %v3444_v5, %v558_v41 }
  0xd2   : > { %v847_v52 = vrot.slane %v846_v50, 4  ;;  %v624_v53 = vrot.slane %v610_v44, %v3423_v43  ;;  %v625_v54 = vcombine.high %v617_v45, %v617_v45  ;;  %v641_v55 = vrot.slane %v627_v46, %v3423_v43 }
  0xd3   : > { %v660_v57 = vcombine.high %v3485_v48, %v3485_v48  ;;  %v3496_v58 = vsel %vm761_vm3, %v659_v49, 0.0  ;;  %v642_v59 = vcombine.high %v634_v47, %v634_v47  ;;  %v790_v60 = vsel %vm761_vm3, %v617_v45, 0.0 }
  0xd4   : > { %v3499_v61 = vadd.f32 %v847_v52, %v846_v50  ;;  %v626_v62 = vcombine.high %v624_v53, %v624_v53  ;;  %v643_v2 = vcombine.high %v641_v55, %v641_v55  ;;  %v791_v3 = vrot.slane %v790_v60, 4 }
  0xd5   : > { %v867_v1 = vsel %vm761_vm3, %v660_v57, 0.0  ;;  %v797_v4 = vsel %vm761_vm3, %v625_v54, 0.0  ;;  %v854_v7 = vrot.slane %v3496_v58, 4  ;;  %v3508_v10 = vsel %vm761_vm3, %v624_v53, 0.0 }
  0xd6   : > { %v849_v6 = vrot.slane %v3499_v61, 2  ;;  %v868_v8 = vrot.slane %v867_v1, 4  ;;  %v792_v11 = vadd.f32 %v791_v3, %v790_v60  ;;  %v811_v13 = vsel %vm761_vm3, %v626_v62, 0.0 }
  0xd7   : > { %v818_v14 = vsel %vm761_vm3, %v634_v47, 0.0  ;;  %v825_v15 = vsel %vm761_vm3, %v642_v59, 0.0  ;;  %v798_v17 = vrot.slane %v797_v4, 4  ;;  %v812_v19 = vrot.slane %v811_v13, 4 }
  0xd8   : > { %v869_v16 = vadd.f32 %v868_v8, %v867_v1  ;;  %v819_v20 = vrot.slane %v818_v14, 4  ;;  %v805_v22 = vrot.slane %v3508_v10, 4  ;;  %v826_v23 = vrot.slane %v825_v15, 4 }
  0xd9   : > { %v832_v24 = vsel %vm761_vm3, %v641_v55, 0.0  ;;  %v839_v26 = vsel %vm761_vm3, %v643_v2, 0.0  ;;  %v813_v29 = vadd.f32 %v812_v19, %v811_v13  ;;  %v793_v35 = vrot.slane %v792_v11, 2 }
  0xda   : > { %v870_v28 = vrot.slane %v869_v16, 2  ;;  %v820_v30 = vadd.f32 %v819_v20, %v818_v14  ;;  %v833_v34 = vrot.slane %v832_v24, 4  ;;  %v827_v36 = vadd.f32 %v826_v23, %v825_v15 }
  0xdb   : > { %v840_v39 = vrot.slane %v839_v26, 4  ;;  %v581_v40 = vmax.f32 %v573_v56, 0.0  ;;  %v814_v44 = vrot.slane %v813_v29, 2  ;;  %v3519_v59 = vadd.f32 %v798_v17, %v797_v4 }
  0xdc   : > { %v871_v41 = vadd.f32 %v870_v28, %v869_v16  ;;  %v821_v45 = vrot.slane %v820_v30, 2  ;;  %v834_v46 = vadd.f32 %v833_v34, %v832_v24  ;;  %v828_v47 = vrot.slane %v827_v36, 2 }
  0xdd   : > { %v3516_v49 = vadd.f32 %v840_v39, %v839_v26  ;;  %v661_v50 = vcombine.high %v581_v40, %v581_v40  ;;  %v668_v52 = vrot.slane %v581_v40, %v3423_v43  ;;  %v815_v54 = vadd.f32 %v814_v44, %v813_v29  ;;  %v409_v39 = vpop.permute.xlu0 %408 }
  0xde   : > { %v872_v53 = vrot.slane %v871_v41, 1  ;;  %v822_v55 = vadd.f32 %v821_v45, %v820_v30  ;;  %v835_v57 = vrot.slane %v834_v46, 2  ;;  %v829_v60 = vadd.f32 %v828_v47, %v827_v36 }
  0xdf   : > { %v675_v62 = vrot.slane %v661_v50, %v3423_v43  ;;  %v676_v56 = vcombine.high %v668_v52, %v668_v52  ;;  %v816_v2 = vrot.slane %v815_v54, 1  ;;  %v874_v15 = vsel %vm761_vm3, %v668_v52, 0.0 }
  0xe0   : > { %v873_v1 = vadd.f32 %v872_v53, %v871_v41  ;;  %v823_v3 = vrot.slane %v822_v55, 1  ;;  %v836_v8 = vadd.f32 %v835_v57, %v834_v46  ;;  %v830_v13 = vrot.slane %v829_v60, 1 }
  0xe1   : > { %v677_v14 = vcombine.high %v675_v62, %v675_v62  ;;  %v881_v16 = vsel %vm761_vm3, %v676_v56, 0.0  ;;  %v3524_v19 = vadd.f32 %v793_v35, %v792_v11  ;;  %v842_v4 = vrot.slane %v3516_v49, 2 }
  0xe2   : > { %v824_v20 = vadd.f32 %v823_v3, %v822_v55  ;;  %v837_v23 = vrot.slane %v836_v8, 1  ;;  %v3527_v17 = vmul.f32 0.5, %v873_v1  ;;  %v875_v24 = vrot.slane %v874_v15, 4 }
  0xe3   : > { %v882_v26 = vrot.slane %v881_v16, 4  ;;  %v888_v28 = vsel %vm761_vm3, %v675_v62, 0.0  ;;  %v3530_v29 = vadd.f32 %v816_v2, %v815_v54  ;;  %v831_v30 = vadd.f32 %v830_v13, %v829_v60  ;;  %v442_v13 = vpop.permute.xlu0 %441 }
  0xe4   : > { %v889_v34 = vrot.slane %v888_v28, 4  ;;  %v895_v36 = vsel %vm761_vm3, %v677_v14, 0.0  ;;  %v3533_v40 = vadd.f32 %v837_v23, %v836_v8  ;;  %v876_v11 = vadd.f32 %v875_v24, %v874_v15 }
  0xe5   : > { %v883_v35 = vadd.f32 %v882_v26, %v881_v16  ;;  %v896_v41 = vrot.slane %v895_v36, 4  ;;  %v3535_v44 = vmul.f32 0.5, %v824_v20  ;;  %v554_v46 = vadd.f32 %v3489_v51, %v3480_v42 }
  0xe6   : > { %v890_v45 = vadd.f32 %v889_v34, %v888_v28  ;;  %v3541_v47 = vmul.f32 %v3410_v33, %v3457_v18  ;;  %v877_v50 = vrot.slane %v876_v11, 2  ;;  %v456_v54 = vmul.f32 %v3405_v32, %v409_v39 }
  0xe7   : > { %v884_v52 = vrot.slane %v883_v35, 2  ;;  %v897_v53 = vadd.f32 %v896_v41, %v895_v36  ;;  %v3544_v55 = vmul.f32 0.5, %v831_v30  ;;  %v569_v60 = vadd.f32 %v3444_v5, %v554_v46 }
  0xe8   : > { %v891_v57 = vrot.slane %v890_v45, 2  ;;  %v516_v62 = vmul.f32 %v3410_v33, %v409_v39  ;;  %v878_v56 = vadd.f32 %v877_v50, %v876_v11  ;;  %v480_v42 = vrot.slane %v456_v54, 1 }
  0xe9   : > { %v885_v1 = vadd.f32 %v884_v52, %v883_v35  ;;  %v898_v2 = vrot.slane %v897_v53, 2  ;;  %v577_v3 = vmax.f32 %v569_v60, 0.0  ;;  %v542_v18 = vrot.slane %v3541_v47, 2 }
  0xea   : > { %v892_v51 = vadd.f32 %v891_v57, %v890_v45  ;;  %v427_v8 = vmul.f32 %v3415_v37, %v409_v39  ;;  %v879_v14 = vrot.slane %v878_v56, 1  ;;  %v481_v16 = vsel %vm468_vm1, %v478_v9, %v480_v42 }
  0xeb   : > { %v886_v15 = vrot.slane %v885_v1, 1  ;;  %v540_v20 = vrot.slane %v516_v62, 2  ;;  %v593_v24 = vcombine.high %v577_v3, %v577_v3  ;;  %v600_v26 = vrot.slane %v577_v3, %v3423_v43 }
  0xec   : > { %v893_v23 = vrot.slane %v892_v51, 1  ;;  %v483_v28 = vsel %vm468_vm1, %v480_v42, %v482_v0  ;;  %v880_v30 = vadd.f32 %v879_v14, %v878_v56  ;;  %v3557_v34 = vadd.f32 %v898_v2, %v897_v53 }
  0xed   : > { %v499_v37 = vadd.f32 %v481_v16, %v3464_v25  ;;  %v458_v36 = vmul.f32 %v3405_v32, %v442_v13  ;;  %v607_v63 = vrot.slane %v593_v24, %v3423_v43  ;;  %v608_v39 = vcombine.high %v600_v26, %v600_v26 }
  0xee   : > { %v762_v9 = vsel %vm761_vm3, %v600_v26, 0.0  ;;  %v500_v11 = vadd.f32 %v483_v28, %v427_v8  ;;  %v887_v35 = vadd.f32 %v886_v15, %v885_v1  ;;  %v894_v41 = vadd.f32 %v893_v23, %v892_v51 }
  0xef   : > { %v3563_v45 = vmul.f32 0.5, %v880_v30  ;;  %v763_v46 = vrot.slane %v762_v9, 4  ;;  %v609_v50 = vcombine.high %v607_v63, %v607_v63  ;;  %v769_v52 = vsel %vm761_vm3, %v608_v39, 0.0 }
  0xf0   : > { %v776_v53 = vsel %vm761_vm3, %v607_v63, 0.0  ;;  %v541_v32 = vsel %vm528_vm2, %v538_v21, %v540_v20  ;;  %v770_v54 = vrot.slane %v769_v52, 4  ;;  %v543_v60 = vsel %vm528_vm2, %v540_v20, %v542_v18 }
  0xf1   : > { %v764_v25 = vadd.f32 %v763_v46, %v762_v9  ;;  %v777_v57 = vrot.slane %v776_v53, 4  ;;  %v783_v62 = vsel %vm761_vm3, %v609_v50, 0.0  ;;  %v559_v56 = vadd.f32 %v541_v32, %v499_v37 }
  0xf2   : > { %v560_v1 = vadd.f32 %v543_v60, %v500_v11  ;;  %v484_v2 = vrot.slane %v458_v36, 1  ;;  %v771_v51 = vadd.f32 %v770_v54, %v769_v52  ;;  %v784_v8 = vrot.slane %v783_v62, 4 }
  0xf3   : > { %v765_v42 = vrot.slane %v764_v25, 2  ;;  %v778_v3 = vadd.f32 %v777_v57, %v776_v53  ;;  %v3574_v14 = vmul.f32 0.5, %v887_v35  ;;  %v3576_v12 = vmul.f32 0.5, %v894_v41 }
  0xf4   : > { %v574_v21 = vadd.f32 %v3444_v5, %v559_v56  ;;  %v575_v15 = vadd.f32 %v3444_v5, %v560_v1  ;;  %v772_v23 = vrot.slane %v771_v51, 2  ;;  %v785_v24 = vadd.f32 %v784_v8, %v783_v62 }
  0xf5   : > { %v766_v16 = vadd.f32 %v765_v42, %v764_v25  ;;  %v779_v20 = vrot.slane %v778_v3, 2  ;;  %v485_v30 = vsel %vm468_vm1, %v482_v0, %v484_v2  ;;  %v518_v37 = vmul.f32 %v3410_v33, %v442_v13 }
  0xf6   : > { %v582_v26 = vmax.f32 %v574_v21, 0.0  ;;  %v583_v28 = vmax.f32 %v575_v15, 0.0  ;;  %v773_v63 = vadd.f32 %v772_v23, %v771_v51  ;;  %v786_v9 = vrot.slane %v785_v24, 2 }
  0xf7   : > { %v767_v36 = vrot.slane %v766_v16, 1  ;;  %v780_v39 = vadd.f32 %v779_v20, %v778_v3  ;;  %v501_v32 = vadd.f32 %v485_v30, %v3470_v31  ;;  %v544_v13 = vrot.slane %v518_v37, 2 }
  0xf8   : > { %v678_v11 = vcombine.high %v582_v26, %v582_v26  ;;  %v685_v35 = vrot.slane %v582_v26, %v3423_v43  ;;  %v695_v41 = vcombine.high %v583_v28, %v583_v28  ;;  %v702_v46 = vrot.slane %v583_v28, %v3423_v43 }
  0xf9   : > { %v768_v50 = vadd.f32 %v767_v36, %v766_v16  ;;  %v774_v52 = vrot.slane %v773_v63, 1  ;;  %v781_v53 = vrot.slane %v780_v39, 1  ;;  %v787_v62 = vadd.f32 %v786_v9, %v785_v24 }
  0xfa   : > { %v692_v38 = vrot.slane %v678_v11, %v3423_v43  ;;  %v693_v0 = vcombine.high %v685_v35, %v685_v35  ;;  %v709_v33 = vrot.slane %v695_v41, %v3423_v43  ;;  %v710_v57 = vcombine.high %v702_v46, %v702_v46 }
  0xfb   : > { %v775_v25 = vadd.f32 %v774_v52, %v773_v63  ;;  %v782_v54 = vadd.f32 %v781_v53, %v780_v39  ;;  %v902_v60 = vsel %vm761_vm3, %v685_v35, 0.0  ;;  %v3591_v42 = vmul.f32 0.5, %v768_v50 }
  0xfc   : > { %v694_v56 = vcombine.high %v692_v38, %v692_v38  ;;  %v903_v1 = vrot.slane %v902_v60, 4  ;;  %v909_v2 = vsel %vm761_vm3, %v693_v0, 0.0  ;;  %v711_v51 = vcombine.high %v709_v33, %v709_v33 }
  0xfd   : > { %v910_v31 = vrot.slane %v909_v2, 4  ;;  %v916_v3 = vsel %vm761_vm3, %v692_v38, 0.0  ;;  %v3594_v8 = vmul.f32 0.5, %v775_v25  ;;  %v930_v16 = vsel %vm761_vm3, %v702_v46, 0.0 }
  0xfe   : > { %v904_v21 = vadd.f32 %v903_v1, %v902_v60  ;;  %v923_v15 = vsel %vm761_vm3, %v694_v56, 0.0  ;;  %v3598_v23 = vmul.f32 0.5, %v782_v54  ;;  %v931_v24 = vrot.slane %v930_v16, 4 }
  0xff   : > { %v924_v20 = vrot.slane %v923_v15, 4  ;;  %v937_v26 = vsel %vm761_vm3, %v710_v57, 0.0  ;;  %v917_v30 = vrot.slane %v916_v3, 4  ;;  %v944_v36 = vsel %vm761_vm3, %v709_v33, 0.0 }
 0x100   : > { %v905_v28 = vrot.slane %v904_v21, 2  ;;  %v938_v37 = vrot.slane %v937_v26, 4  ;;  %v3602_v63 = vadd.f32 %v910_v31, %v909_v2  ;;  %v932_v9 = vadd.f32 %v931_v24, %v930_v16 }
 0x101   : > { %v925_v39 = vadd.f32 %v924_v20, %v923_v15  ;;  %v945_v11 = vrot.slane %v944_v36, 4  ;;  %v951_v46 = vsel %vm761_vm3, %v711_v51, 0.0  ;;  %v545_v50 = vsel %vm528_vm2, %v542_v18, %v544_v13 }
 0x102   : > { %v3604_v35 = vadd.f32 %v905_v28, %v904_v21  ;;  %v939_v41 = vadd.f32 %v938_v37, %v937_v26  ;;  %v933_v53 = vrot.slane %v932_v9, 2  ;;  %v952_v0 = vrot.slane %v951_v46, 4 }
 0x103   : > { %v926_v52 = vrot.slane %v925_v39, 2  ;;  %v946_v38 = vadd.f32 %v945_v11, %v944_v36  ;;  %v3610_v25 = vadd.f32 %v917_v30, %v916_v3  ;;  %v561_v54 = vadd.f32 %v545_v50, %v501_v32 }
 0x104   : > { %v940_v33 = vrot.slane %v939_v41, 2  ;;  %v788_v57 = vrot.slane %v787_v62, 1  ;;  %v934_v56 = vadd.f32 %v933_v53, %v932_v9  ;;  %v3612_v2 = vadd.f32 %v952_v0, %v951_v46 }
 0x105   : > { %v927_v60 = vadd.f32 %v926_v52, %v925_v39  ;;  %v947_v1 = vrot.slane %v946_v38, 2  ;;  %v912_v51 = vrot.slane %v3602_v63, 2  ;;  %v576_v47 = vadd.f32 %v3444_v5, %v561_v54 }
 0x106   : > { %v941_v31 = vadd.f32 %v940_v33, %v939_v41  ;;  %v795_v18 = vrot.slane %v3524_v19, 1  ;;  %v907_v13 = vrot.slane %v3604_v35, 1  ;;  %v935_v3 = vrot.slane %v934_v56, 1 }
 0x107   : > { %v928_v21 = vrot.slane %v927_v60, 1  ;;  %v948_v15 = vadd.f32 %v947_v1, %v946_v38  ;;  %v584_v32 = vmax.f32 %v576_v47, 0.0  ;;  %v789_v20 = vadd.f32 %v788_v57, %v787_v62 }
 0x108   : > { %v942_v16 = vrot.slane %v941_v31, 1  ;;  %v800_v24 = vrot.slane %v3519_v59, 2  ;;  %v954_v28 = vrot.slane %v3612_v2, 2  ;;  %v796_v30 = vadd.f32 %v795_v18, %v3524_v19 }
 0x109   : > { %v949_v26 = vrot.slane %v948_v15, 1  ;;  %v806_v5 = vadd.f32 %v805_v22, %v3508_v10  ;;  %v936_v37 = vadd.f32 %v935_v3, %v934_v56  ;;  %v712_v36 = vcombine.high %v584_v32, %v584_v32 }
 0x10a   : > { %v719_v39 = vrot.slane %v584_v32, %v3423_v43  ;;  %v801_v9 = vadd.f32 %v800_v24, %v3519_v59  ;;  %v3626_v11 = vadd.f32 %v928_v21, %v927_v60  ;;  %v3628_v62 = vadd.f32 %v942_v16, %v941_v31 }
 0x10b   : > { %v807_v41 = vrot.slane %v806_v5, 2  ;;  %v843_v46 = vadd.f32 %v842_v4, %v3516_v49  ;;  %v3633_v19 = vadd.f32 %v949_v26, %v948_v15  ;;  %v3636_v10 = vrot.slane %v712_v36, %v3423_v43 }
 0x10c   : > { %v727_v22 = vcombine.high %v719_v39, %v719_v39  ;;  %v958_v50 = vsel %vm761_vm3, %v719_v39, 0.0  ;;  %v802_v52 = vrot.slane %v801_v9, 1  ;;  %v3639_v0 = vmul.f32 0.5, %v936_v37 }
 0x10d   : > { %v959_v59 = vrot.slane %v958_v50, 4  ;;  %v808_v53 = vadd.f32 %v807_v41, %v806_v5  ;;  %v844_v38 = vrot.slane %v843_v46, 1  ;;  %v972_v4 = vsel %vm761_vm3, %v3636_v10, 0.0 }
 0x10e   : > { %v965_v49 = vsel %vm761_vm3, %v727_v22, 0.0  ;;  %v850_v33 = vadd.f32 %v849_v6, %v3499_v61  ;;  %v728_v54 = vcombine.high %v3636_v10, %v3636_v10  ;;  %v973_v56 = vrot.slane %v972_v4, 4  ;;  %v2779_v10 = vld [vmem:[%s3941_s3 + $0x10] sm:$0xff] }
 0x10f   : > { %v960_v57 = vadd.f32 %v959_v59, %v958_v50  ;;  %v966_v60 = vrot.slane %v965_v49, 4  ;;  %v803_v1 = vadd.f32 %v802_v52, %v801_v9  ;;  %v809_v31 = vrot.slane %v808_v53, 1 }
 0x110   : > { %v851_v47 = vrot.slane %v850_v33, 1  ;;  %v855_v18 = vadd.f32 %v854_v7, %v3496_v58  ;;  %v845_v15 = vadd.f32 %v844_v38, %v843_v46  ;;  %v860_v61 = vsel %vm761_vm3, %v3485_v48, 0.0 }
 0x111   : > { %v961_v21 = vrot.slane %v960_v57, 2  ;;  %v967_v3 = vadd.f32 %v966_v60, %v965_v49  ;;  %v810_v6 = vadd.f32 %v809_v31, %v808_v53  ;;  %v861_v24 = vrot.slane %v860_v61, 4 }
 0x112   : > { %v852_v16 = vadd.f32 %v851_v47, %v850_v33  ;;  %v856_v32 = vrot.slane %v855_v18, 2  ;;  %v974_v37 = vadd.f32 %v973_v56, %v972_v4  ;;  %v989_v36 = vmul.f32 0.5, %v789_v20 }
 0x113   : > { %v3654_v26 = vadd.f32 %v961_v21, %v960_v57  ;;  %v968_v5 = vrot.slane %v967_v3, 2  ;;  %v862_v9 = vadd.f32 %v861_v24, %v860_v61  ;;  %v990_v41 = vmul.f32 0.5, %v796_v30 }
 0x114   : > { %v857_v39 = vadd.f32 %v856_v32, %v855_v18  ;;  %v991_v58 = vmul.f32 0.5, %v803_v1  ;;  %v992_v7 = vmul.f32 0.5, %v810_v6  ;;  %v993_v22 = vmul.f32 0.5, %v3530_v29 }
 0x115   : > { %v996_v46 = vmul.f32 0.5, %v3533_v40  ;;  %v997_v50 = vmul.f32 0.5, %v845_v15  ;;  %v863_v59 = vrot.slane %v862_v9, 2  ;;  %v998_v52 = vmul.f32 0.5, %v852_v16 }
 0x116   : > { %v858_v48 = vrot.slane %v857_v39, 1  ;;  %v1051_v53 = vsel %vm1050_vm4, %v3594_v8, %v3591_v42  ;;  %v1063_v30 = vsel %vm1062_vm6, %v3535_v44, %v993_v22  ;;  %v900_v38 = vrot.slane %v3557_v34, 1 }
 0x117   : > { %v1053_v20 = vsel %vm1052_vm5, %v3598_v23, %v1051_v53  ;;  %v908_v29 = vadd.f32 %v907_v13, %v3604_v35  ;;  %v864_v49 = vadd.f32 %v863_v59, %v862_v9  ;;  %v1064_v33 = vsel %vm1050_vm4, %v3544_v55, %v1063_v30 }
 0x118   : > { %v859_v40 = vadd.f32 %v858_v48, %v857_v39  ;;  %v1055_v4 = vsel %vm1054_vm7, %v989_v36, %v1053_v20  ;;  %v1065_v8 = vsel %vm1052_vm5, %v996_v46, %v1064_v33  ;;  %v901_v44 = vadd.f32 %v900_v38, %v3557_v34 }
 0x119   : > { %v1057_v42 = vsel %vm1056_vm8, %v990_v41, %v1055_v4  ;;  %v913_v23 = vadd.f32 %v912_v51, %v3602_v63  ;;  %v865_v57 = vrot.slane %v864_v49, 1  ;;  %v1066_v60 = vsel %vm1054_vm7, %v997_v50, %v1065_v8 }
 0x11a   : > { %v999_v35 = vmul.f32 0.5, %v859_v40  ;;  %v1059_v13 = vsel %vm1058_vm9, %v991_v58, %v1057_v42  ;;  %v1067_v55 = vsel %vm1056_vm8, %v998_v52, %v1066_v60  ;;  %v919_v31 = vrot.slane %v3610_v25, 2 }
 0x11b   : > { %v1061_v56 = vsel %vm1060_vm10, %v992_v7, %v1059_v13  ;;  %v914_v1 = vrot.slane %v913_v23, 1  ;;  %v963_v47 = vrot.slane %v3654_v26, 1  ;;  %v866_v34 = vadd.f32 %v865_v57, %v864_v49 }
 0x11c   : > { %v1068_v18 = vsel %vm1058_vm9, %v999_v35, %v1067_v55  ;;  %v3686_v63 = vsel %vm361_vm0, 0.0, %v1061_v56  ;;  %v920_v15 = vadd.f32 %v919_v31, %v3610_v25  ;;  %v1005_v61 = vmul.f32 0.5, %v901_v44 }
 0x11d   : > { %v1093_v51 = vrot.slane %v3686_v63, 1  ;;  %v915_v21 = vadd.f32 %v914_v1, %v913_v23  ;;  %v1000_v6 = vmul.f32 0.5, %v866_v34  ;;  %v1006_v16 = vmul.f32 0.5, %v908_v29 }
 0x11e   : > { %v1070_v32 = vsel %vm1062_vm6, %v3563_v45, %v3527_v17  ;;  %v955_v24 = vadd.f32 %v954_v28, %v3612_v2  ;;  %v921_v36 = vrot.slane %v920_v15, 1  ;;  %v969_v41 = vadd.f32 %v968_v5, %v967_v3 }
 0x11f   : > { %v1007_v39 = vmul.f32 0.5, %v915_v21  ;;  %v1071_v9 = vsel %vm1050_vm4, %v3574_v14, %v1070_v32  ;;  %v3699_v58 = vsel %vm1060_vm10, %v1000_v6, %v1068_v18  ;;  %v975_v22 = vrot.slane %v974_v37, 2 }
 0x120   : > { %v1072_v25 = vsel %vm1052_vm5, %v3576_v12, %v1071_v9  ;;  %v956_v7 = vrot.slane %v955_v24, 1  ;;  %v1094_v17 = vrot.slane %v3699_v58, 1  ;;  %v922_v45 = vadd.f32 %v921_v36, %v920_v15  ;;  %v2786_v36 = vld [vmem:[%s3943_s5 + $0x18] sm:$0xff]  ;;  %v1662_v9 = vld [vmem:[%s3943_s5] sm:$0xff] }
 0x121   : > { %v1073_v46 = vsel %vm1054_vm7, %v1005_v61, %v1072_v25  ;;  %v970_v2 = vrot.slane %v969_v41, 1  ;;  %v976_v48 = vadd.f32 %v975_v22, %v974_v37  ;;  %v1009_v14 = vmul.f32 0.5, %v3626_v11  ;;  %v3771_v25 = vld [vmem:[%s3942_s4] ss:$0 sm:$0xff] }
 0x122   : > { %v1074_v28 = vsel %vm1056_vm8, %v1006_v16, %v1073_v46  ;;  %v957_v50 = vadd.f32 %v956_v7, %v955_v24  ;;  %v1095_v3 = vsel %vm468_vm1, %v1093_v51, %v1094_v17  ;;  %v1008_v5 = vmul.f32 0.5, %v922_v45  ;;  %v2785_v24 = vld [vmem:[%s3943_s5 + $0x10] sm:$0xff] }
 0x123   : > { %v1075_v59 = vsel %vm1058_vm9, %v1007_v39, %v1074_v28  ;;  %v964_v12 = vadd.f32 %v963_v47, %v3654_v26  ;;  %v1011_v52 = vmul.f32 0.5, %v3628_v62  ;;  %2877 = vmatprep.mubr.msk.f32.mxu0 %vm1102_vm11, %v1095_v3  ;;  %v971_v53 = vadd.f32 %v970_v2, %v969_v41  ;;  %v1663_v41 = vld [vmem:[%s3943_s5 + $0x8] sm:$0xff] }
 0x124   : > { %v977_v20 = vrot.slane %v976_v48, 1  ;;  %v1076_v30 = vsel %vm1060_vm10, %v1008_v5, %v1075_v59  ;;  %v1012_v38 = vmul.f32 0.5, %v3633_v19  ;;  %v1077_v11 = vsel %vm1062_vm6, %v3639_v0, %v1009_v14 }
 0x125   : > { %v979_v37 = vsel %vm761_vm3, %v728_v54, 0.0  ;;  %v1096_v29 = vrot.slane %v1076_v30, 1  ;;  %v1013_v40 = vmul.f32 0.5, %v957_v50  ;;  %v1078_v62 = vsel %vm1050_vm4, %v1011_v52, %v1077_v11 }
 0x126   : > { %v978_v26 = vadd.f32 %v977_v20, %v976_v48  ;;  %v1014_v49 = vmul.f32 0.5, %v964_v12  ;;  %v1079_v4 = vsel %vm1052_vm5, %v1012_v38, %v1078_v62  ;;  %v980_v33 = vrot.slane %v979_v37, 4 }
 0x127   : > { %v1097_v42 = vsel %vm468_vm1, %v1094_v17, %v1096_v29  ;;  %v1015_v19 = vmul.f32 0.5, %v971_v53  ;;  %v1080_v8 = vsel %vm1054_vm7, %v1013_v40, %v1079_v4  ;;  %v1292_v47 = vrot.slane %v3699_v58, 2 }
 0x128   : > { %2878 = vmatmul.mubr.msk.f32.vlgmr.msra.gmra.mrb[0].mxu0 %vm1102_vm11, %v1097_v42  ;;  %v1016_v0 = vmul.f32 0.5, %v978_v26  ;;  %v1081_v54 = vsel %vm1056_vm8, %v1014_v49, %v1080_v8  ;;  %v981_v44 = vadd.f32 %v980_v33, %v979_v37  ;;  %v1294_v34 = vrot.slane %v1076_v30, 2 }
 0x129   : > { %2884 = vmatpush3.msra.mxu0 %v3399_v27  ;;  %2885 = vmatprep.mubr.msk.f32.mxu0 %vm1102_vm11, %v3686_v63  ;;  %v1082_v23 = vsel %vm1058_vm9, %v1015_v19, %v1081_v54  ;;  %v1291_v27 = vrot.slane %v3686_v63, 2  ;;  %v3008_v39 = vpack.c.bf16 %v2786_v36, %v2785_v24 }
 0x12a   : > { %v1083_v57 = vsel %vm1060_vm10, %v1016_v0, %v1082_v23  ;;  %v982_v35 = vrot.slane %v981_v44, 2  ;;  %2891 = vmatprep.subr.mxu0 %v2779_v10  ;;  %v1295_v63 = vsel %vm528_vm2, %v1292_v47, %v1294_v34 }
 0x12b   : > { %v1098_v13 = vrot.slane %v1083_v57, 1  ;;  %v1293_v51 = vsel %vm528_vm2, %v1291_v27, %v1292_v47  ;;  %v1296_v21 = vrot.slane %v1083_v57, 2  ;;  %3009 = vmatprep.subr.bf16.mxu1 %v3008_v39 }
 0x12c   : > { %v983_v60 = vadd.f32 %v982_v35, %v981_v44 }
 0x12d   : > { %v1099_v56 = vsel %vm468_vm1, %v1096_v29, %v1098_v13  ;;  %v1297_v6 = vsel %vm528_vm2, %v1294_v34, %v1296_v21 }
 0x12e   : > { %2880 = vmatprep.mubr.msk.f32.mxu1 %vm1102_vm11, %v1099_v56  ;;  %v984_v55 = vrot.slane %v983_v60, 1 }
 0x130   : > { %v985_v1 = vadd.f32 %v984_v55, %v983_v60  ;;  %2886 = vmatmul.mubr.msk.f32.vlgmr.msra.gmra.mrb[0].mxu0 %vm1102_vm11, %v3699_v58  ;;  %v3765_v58 = vpack.c.bf16 %v1663_v41, %v1662_v9 }
 0x131   : > { %2892 = vmatpush3.msra.mxu0 %v2779_v10  ;;  %2888 = vmatprep.mubr.msk.f32.mxu0 %vm1102_vm11, %v1076_v30 }
 0x132   : > { %v1017_v31 = vmul.f32 0.5, %v985_v1 }
 0x134   : > { %v1087_v18 = vsel %vm361_vm0, %v1017_v31, 0.0  ;;  %2889 = vmatmul.mubr.msk.f32.gmra.mrb[2].mxu0 %vm1102_vm11, %v1083_v57 }
 0x135   : > { %v1100_v15 = vrot.slane %v1087_v18, 1  ;;  %2893 = vmatprep.mubr.msk.f32.mxu0 %vm1102_vm11, %v1293_v51  ;;  %v1298_v16 = vrot.slane %v1087_v18, 2 }
 0x137   : > { %v1101_v61 = vsel %vm468_vm1, %v1098_v13, %v1100_v15  ;;  %v1299_v32 = vsel %vm528_vm2, %v1296_v21, %v1298_v16 }
 0x138   : > { %2881 = vmatmul.mubr.msk.f32.vlgmr.msra.gmra.mrb[0].mxu1 %vm1102_vm11, %v1101_v61  ;;  %2894 = vmatmul.mubr.msk.f32.vlgmr.msra.gmra.mrb[0].mxu0 %vm1102_vm11, %v1295_v63 }
 0x139   : > { %2896 = vmatprep.mubr.msk.f32.mxu0 %vm1102_vm11, %v1297_v6  ;;  %3011 = vmatpush3.bf16.msra.mxu1 %v3008_v39 }
 0x13a   : > { %3013 = vmatprep.subr.bf16.mxu1 %v3765_v58 }
 0x13c   : > { %2897 = vmatmul.mubr.msk.f32.gmra.mrb[2].mxu0 %vm1102_vm11, %v1299_v32 }
 0x20b   : > { %v2882_v7 = vpop.f32.mrb[0].mxu1  ;;  %v2895_v22 = vpop.f32.mrb[0].mxu0 }
 0x20c   : > { %v1187_v17 = vpop.f32.mrb[1].mxu1  ;;  %v1405_v45 = vadd.f32 %v2895_v22, %v3771_v25  ;;  %v1374_v46 = vpop.f32.mrb[1].mxu0 }
 0x20d   : > { %v1404_v2 = vadd.f32 %v3771_v25, %v1374_v46 }
 0x20e   : > { %v1409_v28 = vmax.f32 %v1405_v45, 0.0 }
 0x20f   : > { %v1408_v50 = vmax.f32 %v1404_v2, 0.0  ;;  %v2898_v48 = vpop.f32.mrb[2].mxu0 }
 0x210   : > { %v1433_v14 = vcombine.high %v1409_v28, %v1409_v28  ;;  %v1440_v3 = vrot.slane %v1409_v28, %v3423_v43  ;;  %v3070_v5 = vadd.f32 %v2898_v48, %v2882_v7  ;;  %v1384_v59 = vpop.f32.mrb[3].mxu0 }
 0x211   : > { %v1416_v12 = vcombine.high %v1408_v50, %v1408_v50  ;;  %v1423_v52 = vrot.slane %v1408_v50, %v3423_v43  ;;  %v3071_v53 = vadd.f32 %v1384_v59, %v1187_v17 }
 0x212   : > { %v1447_v20 = vrot.slane %v1433_v14, %v3423_v43  ;;  %v1448_v30 = vcombine.high %v1440_v3, %v1440_v3  ;;  %v1529_v38 = vsel %vm1500_vm12, %v1440_v3, 0.0  ;;  %v1407_v16 = vadd.f32 %v3070_v5, %v3771_v25 }
 0x213   : > { %v1530_v11 = vrot.slane %v1529_v38, 4  ;;  %v1430_v37 = vrot.slane %v1416_v12, %v3423_v43  ;;  %v1431_v29 = vcombine.high %v1423_v52, %v1423_v52  ;;  %v1501_v26 = vsel %vm1500_vm12, %v1423_v52, 0.0 }
 0x214   : > { %v1449_v40 = vcombine.high %v1447_v20, %v1447_v20  ;;  %v1536_v62 = vsel %vm1500_vm12, %v1448_v30, 0.0  ;;  %v1543_v49 = vsel %vm1500_vm12, %v1447_v20, 0.0  ;;  %v1502_v4 = vrot.slane %v1501_v26, 4 }
 0x215   : > { %v1531_v33 = vadd.f32 %v1530_v11, %v1529_v38  ;;  %v1537_v42 = vrot.slane %v1536_v62, 4  ;;  %v1544_v19 = vrot.slane %v1543_v49, 4  ;;  %v1432_v8 = vcombine.high %v1430_v37, %v1430_v37 }
 0x216   : > { %v1503_v10 = vadd.f32 %v1502_v4, %v1501_v26  ;;  %v1508_v0 = vsel %vm1500_vm12, %v1431_v29, 0.0  ;;  %v1515_v54 = vsel %vm1500_vm12, %v1430_v37, 0.0  ;;  %v1550_v57 = vsel %vm1500_vm12, %v1449_v40, 0.0 }
 0x217   : > { %v1532_v44 = vrot.slane %v1531_v33, 2  ;;  %v1538_v23 = vadd.f32 %v1537_v42, %v1536_v62  ;;  %v1509_v13 = vrot.slane %v1508_v0, 4  ;;  %v1516_v60 = vrot.slane %v1515_v54, 4 }
 0x218   : > { %v1504_v35 = vrot.slane %v1503_v10, 2  ;;  %v1522_v56 = vsel %vm1500_vm12, %v1432_v8, 0.0  ;;  %v1545_v55 = vadd.f32 %v1544_v19, %v1543_v49  ;;  %v1551_v51 = vrot.slane %v1550_v57, 4 }
 0x219   : > { %v1510_v27 = vadd.f32 %v1509_v13, %v1508_v0  ;;  %v1517_v31 = vadd.f32 %v1516_v60, %v1515_v54  ;;  %v1523_v47 = vrot.slane %v1522_v56, 4  ;;  %v1533_v34 = vadd.f32 %v1532_v44, %v1531_v33 }
 0x21a   : > { %v1505_v1 = vadd.f32 %v1504_v35, %v1503_v10  ;;  %v1539_v18 = vrot.slane %v1538_v23, 2  ;;  %v1546_v6 = vrot.slane %v1545_v55, 2  ;;  %v1552_v41 = vadd.f32 %v1551_v51, %v1550_v57 }
 0x21b   : > { %v1511_v15 = vrot.slane %v1510_v27, 2  ;;  %v1518_v61 = vrot.slane %v1517_v31, 2  ;;  %v1524_v63 = vadd.f32 %v1523_v47, %v1522_v56  ;;  %v1534_v39 = vrot.slane %v1533_v34, 1 }
 0x21c   : > { %v1506_v21 = vrot.slane %v1505_v1, 1  ;;  %v1540_v9 = vadd.f32 %v1539_v18, %v1538_v23  ;;  %v1547_v46 = vadd.f32 %v1546_v6, %v1545_v55  ;;  %v1411_v2 = vmax.f32 %v1407_v16, 0.0 }
 0x21d   : > { %v1512_v32 = vadd.f32 %v1511_v15, %v1510_v27  ;;  %v1519_v24 = vadd.f32 %v1518_v61, %v1517_v31  ;;  %v1525_v36 = vrot.slane %v1524_v63, 2  ;;  %v1406_v14 = vadd.f32 %v3071_v53, %v3771_v25 }
 0x21e   : > { %v1507_v7 = vadd.f32 %v1506_v21, %v1505_v1  ;;  %v1535_v3 = vadd.f32 %v1534_v39, %v1533_v34  ;;  %v1553_v59 = vrot.slane %v1552_v41, 2  ;;  %v1467_v5 = vcombine.high %v1411_v2, %v1411_v2 }
 0x21f   : > { %v1513_v22 = vrot.slane %v1512_v32, 1  ;;  %v1520_v17 = vrot.slane %v1519_v24, 1  ;;  %v1526_v45 = vadd.f32 %v1525_v36, %v1524_v63  ;;  %v1474_v12 = vrot.slane %v1411_v2, %v3423_v43 }
 0x220   : > { %v1541_v52 = vrot.slane %v1540_v9, 1  ;;  %v1613_v20 = vmul.f32 0.5, %v1507_v7  ;;  %v1410_v38 = vmax.f32 %v1406_v14, 0.0  ;;  %v1481_v37 = vrot.slane %v1467_v5, %v3423_v43 }
 0x221   : > { %v1514_v28 = vadd.f32 %v1513_v22, %v1512_v32  ;;  %v1521_v50 = vadd.f32 %v1520_v17, %v1519_v24  ;;  %v1527_v48 = vrot.slane %v1526_v45, 1  ;;  %v1482_v29 = vcombine.high %v1474_v12, %v1474_v12 }
 0x222   : > { %v1585_v26 = vsel %vm1500_vm12, %v1474_v12, 0.0  ;;  %v1548_v40 = vrot.slane %v1547_v46, 1  ;;  %v1450_v4 = vcombine.high %v1410_v38, %v1410_v38  ;;  %v1483_v53 = vcombine.high %v1481_v37, %v1481_v37 }
 0x223   : > { %v1614_v30 = vmul.f32 0.5, %v1514_v28  ;;  %v1528_v11 = vadd.f32 %v1527_v48, %v1526_v45  ;;  %v1615_v62 = vmul.f32 0.5, %v1521_v50  ;;  %v1586_v49 = vrot.slane %v1585_v26, 4 }
 0x224   : > { %v1592_v33 = vsel %vm1500_vm12, %v1482_v29, 0.0  ;;  %v1599_v42 = vsel %vm1500_vm12, %v1481_v37, 0.0  ;;  %v1554_v19 = vadd.f32 %v1553_v59, %v1552_v41  ;;  %v1457_v0 = vrot.slane %v1410_v38, %v3423_v43 }
 0x225   : > { %v1645_v25 = vsel %vm1050_vm4, %v1614_v30, %v1613_v20  ;;  %v1593_v8 = vrot.slane %v1592_v33, 4  ;;  %v1600_v10 = vrot.slane %v1599_v42, 4  ;;  %v1542_v54 = vadd.f32 %v1541_v52, %v1540_v9 }
 0x226   : > { %v1616_v44 = vmul.f32 0.5, %v1528_v11  ;;  %v1606_v23 = vsel %vm1500_vm12, %v1483_v53, 0.0  ;;  %v1464_v57 = vrot.slane %v1450_v4, %v3423_v43  ;;  %v1646_v35 = vsel %vm1052_vm5, %v1615_v62, %v1645_v25 }
 0x227   : > { %v1587_v13 = vadd.f32 %v1586_v49, %v1585_v26  ;;  %v1594_v60 = vadd.f32 %v1593_v8, %v1592_v33  ;;  %v1607_v56 = vrot.slane %v1606_v23, 4  ;;  %v1465_v55 = vcombine.high %v1457_v0, %v1457_v0 }
 0x228   : > { %v1466_v1 = vcombine.high %v1464_v57, %v1464_v57  ;;  %v1557_v27 = vsel %vm1500_vm12, %v1457_v0, 0.0  ;;  %v1571_v31 = vsel %vm1500_vm12, %v1464_v57, 0.0  ;;  %v1549_v47 = vadd.f32 %v1548_v40, %v1547_v46 }
 0x229   : > { %v1555_v34 = vrot.slane %v1554_v19, 1  ;;  %v1601_v18 = vadd.f32 %v1600_v10, %v1599_v42  ;;  %v1608_v51 = vadd.f32 %v1607_v56, %v1606_v23  ;;  %v1558_v21 = vrot.slane %v1557_v27, 4 }
 0x22a   : > { %v1564_v15 = vsel %vm1500_vm12, %v1465_v55, 0.0  ;;  %v1572_v61 = vrot.slane %v1571_v31, 4  ;;  %v1578_v63 = vsel %vm1500_vm12, %v1466_v1, 0.0  ;;  %v1588_v6 = vrot.slane %v1587_v13, 2 }
 0x22b   : > { %v1595_v16 = vrot.slane %v1594_v60, 2  ;;  %v1609_v32 = vrot.slane %v1608_v51, 2  ;;  %v1647_v24 = vsel %vm1054_vm7, %v1616_v44, %v1646_v35  ;;  %v1559_v36 = vadd.f32 %v1558_v21, %v1557_v27 }
 0x22c   : > { %v1565_v39 = vrot.slane %v1564_v15, 4  ;;  %v1573_v9 = vadd.f32 %v1572_v61, %v1571_v31  ;;  %v1579_v41 = vrot.slane %v1578_v63, 4  ;;  %v1556_v7 = vadd.f32 %v1555_v34, %v1554_v19 }
 0x22d   : > { %v1617_v22 = vmul.f32 0.5, %v1535_v3  ;;  %v1602_v17 = vrot.slane %v1601_v18, 2  ;;  %v1610_v45 = vadd.f32 %v1609_v32, %v1608_v51  ;;  %v1560_v46 = vrot.slane %v1559_v36, 2  ;;  %v2792_v32 = vld [vmem:[%s3943_s5 + $0x28] sm:$0xff] }
 0x22e   : > { %v1566_v2 = vadd.f32 %v1565_v39, %v1564_v15  ;;  %v1574_v28 = vrot.slane %v1573_v9, 2  ;;  %v1580_v50 = vadd.f32 %v1579_v41, %v1578_v63  ;;  %v1618_v48 = vmul.f32 0.5, %v1542_v54 }
 0x22f   : > { %v1589_v14 = vadd.f32 %v1588_v6, %v1587_v13  ;;  %v1596_v59 = vadd.f32 %v1595_v16, %v1594_v60  ;;  %v1648_v5 = vsel %vm1056_vm8, %v1617_v22, %v1647_v24  ;;  %v1561_v12 = vadd.f32 %v1560_v46, %v1559_v36  ;;  %v2791_v16 = vld [vmem:[%s3943_s5 + $0x20] sm:$0xff] }
 0x230   : > { %v1567_v52 = vrot.slane %v1566_v2, 2  ;;  %v1575_v20 = vadd.f32 %v1574_v28, %v1573_v9  ;;  %v1581_v30 = vrot.slane %v1580_v50, 2  ;;  %v1619_v38 = vmul.f32 0.5, %v1549_v47 }
 0x231   : > { %v1603_v11 = vadd.f32 %v1602_v17, %v1601_v18  ;;  %v1649_v37 = vsel %vm1058_vm9, %v1618_v48, %v1648_v5  ;;  %v1611_v3 = vrot.slane %v1610_v45, 1  ;;  %v1562_v29 = vrot.slane %v1561_v12, 1  ;;  %v2043_v48 = vld [vmem:[#allocation2 + $0x8] sm:$0xff]  ;;  %v2047_v5 = vld [vmem:[#allocation2 + $0x20] sm:$0xff] }
 0x232   : > { %v1568_v26 = vadd.f32 %v1567_v52, %v1566_v2  ;;  %v1576_v40 = vrot.slane %v1575_v20, 1  ;;  %v1582_v62 = vadd.f32 %v1581_v30, %v1580_v50  ;;  %v1590_v49 = vrot.slane %v1589_v14, 1  ;;  %v2042_v50 = vld [vmem:[#allocation2] sm:$0xff]  ;;  %v2044_v52 = vld [vmem:[#allocation2 + $0x10] sm:$0xff] }
 0x233   : > { %v1597_v4 = vrot.slane %v1596_v59, 1  ;;  %v1650_v25 = vsel %vm1060_vm10, %v1619_v38, %v1649_v37  ;;  %v1563_v53 = vadd.f32 %v1562_v29, %v1561_v12  ;;  %v1604_v8 = vrot.slane %v1603_v11, 1  ;;  %v2049_v38 = vld [vmem:[#allocation2 + $0x30] sm:$0xff] }
 0x234   : > { %v1569_v33 = vrot.slane %v1568_v26, 1  ;;  %v1577_v42 = vadd.f32 %v1576_v40, %v1575_v20  ;;  %v1583_v19 = vrot.slane %v1582_v62, 1  ;;  %v1612_v10 = vadd.f32 %v1611_v3, %v1610_v45  ;;  %v2045_v20 = vld [vmem:[#allocation2 + $0x18] sm:$0xff]  ;;  %v2795_v29 = vld [vmem:[%s3944_s6] ss:$0 sm:$0xff] }
 0x235   : > { %v1620_v0 = vmul.f32 0.5, %v1556_v7  ;;  %v1621_v23 = vmul.f32 0.5, %v1563_v53  ;;  %v1591_v57 = vadd.f32 %v1590_v49, %v1589_v14  ;;  %v1598_v13 = vadd.f32 %v1597_v4, %v1596_v59 }
 0x236   : > { %v1570_v54 = vadd.f32 %v1569_v33, %v1568_v26  ;;  %v1584_v44 = vadd.f32 %v1583_v19, %v1582_v62  ;;  %v1623_v35 = vmul.f32 0.5, %v1577_v42  ;;  %v1605_v1 = vadd.f32 %v1604_v8, %v1603_v11  ;;  %v2050_v11 = vld [vmem:[#allocation2 + $0x38] sm:$0xff] }
 0x237   : > { %v1651_v55 = vsel %vm1062_vm6, %v1621_v23, %v1620_v0  ;;  %v1628_v27 = vmul.f32 0.5, %v1612_v10  ;;  %v1625_v47 = vmul.f32 0.5, %v1591_v57  ;;  %v1626_v18 = vmul.f32 0.5, %v1598_v13 }
 0x238   : > { %v1622_v60 = vmul.f32 0.5, %v1570_v54  ;;  %v1624_v56 = vmul.f32 0.5, %v1584_v44  ;;  %v1660_v21 = vsel %vm361_vm0, 0.0, %v1650_v25  ;;  %v1627_v15 = vmul.f32 0.5, %v1605_v1 }
 0x239   : > { %v1661_v63 = vsel %vm361_vm0, %v1628_v27, 0.0  ;;  %v1669_v36 = vrot.slane %v1660_v21, 1  ;;  %v1836_v39 = vrot.slane %v1660_v21, 2  ;;  %v3016_v17 = vpack.c.bf16 %v2792_v32, %v2791_v16  ;;  %v2278_v16 = vld [vmem:[#allocation2 + $0x60] sm:$0xff]  ;;  %v2279_v32 = vld [vmem:[#allocation2 + $0x68] sm:$0xff] }
 0x23a   : > { %v1652_v31 = vsel %vm1050_vm4, %v1622_v60, %v1651_v55  ;;  %v1672_v41 = vrot.slane %v1661_v63, 1  ;;  %v1839_v22 = vrot.slane %v1661_v63, 2  ;;  %v3027_v14 = vpack.c.bf16 %v2043_v48, %v2042_v50  ;;  %v2199_v50 = vld [vmem:[#allocation2 + $0x40] sm:$0xff]  ;;  %v2200_v48 = vld [vmem:[#allocation2 + $0x48] sm:$0xff] }
 0x23b   : > { %v1653_v34 = vsel %vm1052_vm5, %v1623_v35, %v1652_v31  ;;  %v3242_v59 = vmov 0.0|0.0   ;;  %v3030_v30 = vpack.c.bf16 %v2045_v20, %v2044_v52  ;;  %v3024_v37 = vpack.c.bf16 %v2050_v11, %v2049_v38  ;;  %v2280_v52 = vld [vmem:[#allocation2 + $0x70] sm:$0xff]  ;;  %v2281_v20 = vld [vmem:[#allocation2 + $0x78] sm:$0xff] }
 0x23c   : > { %v1654_v51 = vsel %vm1054_vm7, %v1624_v56, %v1653_v34  ;;  %3026 = vmatprep.subr.bf16.mxu0 %v3242_v59  ;;  %v3244_v3 = vmov 0.0   ;;  %vm2051_vm0 = vcmask 261120   ;;  %v3033_v11 = vpack.c.bf16 %v2200_v48, %v2199_v50 }
 0x23d   : > { %v1655_v61 = vsel %vm1056_vm8, %v1625_v47, %v1654_v51  ;;  %3028 = vmatpush3.bf16.msra.mxu0 %v3027_v14  ;;  %2939 = vmatprep.mubr.msk.f32.mxu0 %vm3243_vm14, %v3244_v3 }
 0x23e   : > { %v1656_v6 = vsel %vm1058_vm9, %v1626_v18, %v1655_v61  ;;  %3029 = vmatprep.subr.bf16.mxu0 %v3242_v59 }
 0x23f   : > { %v1657_v24 = vsel %vm1060_vm10, %v1627_v15, %v1656_v6 }
 0x240   : > { %v1670_v9 = vrot.slane %v1657_v24, 1  ;;  %v1837_v7 = vrot.slane %v1657_v24, 2 }
 0x241   : > { %3031 = vmatpush3.bf16.msra.mxu0 %v3030_v30 }
 0x242   : > { %v1671_v45 = vsel %vm468_vm1, %v1669_v36, %v1670_v9  ;;  %v1673_v46 = vsel %vm468_vm1, %v1670_v9, %v1672_v41  ;;  %v1838_v2 = vsel %vm528_vm2, %v1836_v39, %v1837_v7  ;;  %v1840_v28 = vsel %vm528_vm2, %v1837_v7, %v1839_v22  ;;  %3038 = vmatprep.subr.bf16.mxu0 %v3242_v59 }
 0x243   : > { %2903 = vmatprep.mubr.msk.f32.mxu1 %vm1674_vm13, %v1671_v45  ;;  %vm2674_vm1 = vcmask 253952  }
 0x244   : > { %2904 = vmatmul.mubr.msk.f32.vlgmr.msra.gmra.mrb[2].mxu1 %vm1674_vm13, %v1673_v46 }
 0x245   : > { %3015 = vmatpush3.bf16.msra.mxu1 %v3765_v58  ;;  %2910 = vmatprep.mubr.msk.f32.mxu1 %vm1674_vm13, %v1660_v21  ;;  %v2048_v58 = vld [vmem:[#allocation2 + $0x28] sm:$0xff] }
 0x246   : > { %3017 = vmatprep.subr.bf16.mxu1 %v3016_v17  ;;  %v3021_v12 = vpack.c.bf16 %v2048_v58, %v2047_v5 }
 0x24c   : > { %2911 = vmatmul.mubr.msk.f32.vlgmr.msra.gmra.mrb[2].mxu1 %vm1674_vm13, %v1657_v24 }
 0x24d   : > { %3019 = vmatpush3.bf16.msra.mxu1 %v3016_v17  ;;  %2917 = vmatprep.mubr.msk.f32.mxu1 %vm1674_vm13, %v1838_v2  ;;  %v3039_v17 = vpack.c.bf16 %v2279_v32, %v2278_v16  ;;  %v2515_v16 = vld [vmem:[#allocation2 + $0xc0] sm:$0xff] }
 0x24e   : > { %3020 = vmatprep.subr.bf16.mxu1 %v3242_v59 }
 0x254   : > { %2918 = vmatmul.mubr.msk.f32.vlgmr.msra.gmra.mrb[2].mxu1 %vm1674_vm13, %v1840_v28 }
 0x255   : > { %3022 = vmatpush3.bf16.msra.mxu1 %v3021_v12  ;;  %2928 = vmatprep.mubr.msk.f32.mxu1 %vm3243_vm14, %v3244_v3 }
 0x256   : > { %3023 = vmatprep.subr.bf16.mxu1 %v3242_v59 }
 0x259   : > { %3025 = vmatpush3.bf16.msra.mxu1 %v3024_v37 }
 0x25a   : > { %3032 = vmatprep.subr.bf16.mxu1 %v3242_v59 }
 0x327   : > { %v2919_v26 = vpop.f32.mrb[2].mxu1 }
 0x328   : > { %v1930_v40 = vadd.f32 %v2919_v26, %v2795_v29  ;;  %v1911_v62 = vpop.f32.mrb[3].mxu1 }
 0x329   : > { %v1929_v49 = vadd.f32 %v2795_v29, %v1911_v62  ;;  %v2201_v62 = vld [vmem:[#allocation2 + $0x50] sm:$0xff] }
 0x32a   : > { %v1932_v4 = vmax.f32 %v1930_v40, 0.0  ;;  %v3042_v40 = vpack.c.bf16 %v2281_v20, %v2280_v52 }
 0x32b   : > { %v1931_v25 = vmax.f32 %v1929_v49, 0.0  ;;  %v2202_v49 = vld [vmem:[#allocation2 + $0x58] sm:$0xff] }
 0x32c   : > { %v1952_v53 = vcombine.high %v1932_v4, %v1932_v4  ;;  %v1959_v33 = vrot.slane %v1932_v4, %v3423_v43 }
 0x32d   : > { %v1935_v42 = vcombine.high %v1931_v25, %v1931_v25  ;;  %v1942_v19 = vrot.slane %v1931_v25, %v3423_v43 }
 0x32e   : > { %v1967_v8 = vcombine.high %v1959_v33, %v1959_v33  ;;  %v1966_v10 = vrot.slane %v1952_v53, %v3423_v43  ;;  %v2006_v1 = vsel %vm1977_vm15, %v1959_v33, 0.0 }
 0x32f   : > { %v1949_v0 = vrot.slane %v1935_v42, %v3423_v43  ;;  %v1950_v54 = vcombine.high %v1942_v19, %v1942_v19  ;;  %v1978_v44 = vsel %vm1977_vm15, %v1942_v19, 0.0  ;;  %v2007_v61 = vrot.slane %v2006_v1, 4  ;;  %v2436_v42 = vld [vmem:[#allocation2 + $0xa0] sm:$0xff]  ;;  %v2437_v19 = vld [vmem:[#allocation2 + $0xa8] sm:$0xff] }
 0x330   : > { %v2013_v23 = vsel %vm1977_vm15, %v1967_v8, 0.0  ;;  %v1979_v57 = vrot.slane %v1978_v44, 4  ;;  %v1968_v55 = vcombine.high %v1966_v10, %v1966_v10  ;;  %v2020_v2 = vsel %vm1977_vm15, %v1966_v10, 0.0 }
 0x331   : > { %v1951_v35 = vcombine.high %v1949_v0, %v1949_v0  ;;  %v1985_v60 = vsel %vm1977_vm15, %v1950_v54, 0.0  ;;  %v1992_v56 = vsel %vm1977_vm15, %v1949_v0, 0.0  ;;  %v2014_v27 = vrot.slane %v2013_v23, 4 }
 0x332   : > { %v1980_v13 = vadd.f32 %v1979_v57, %v1978_v44  ;;  %v1986_v47 = vrot.slane %v1985_v60, 4  ;;  %v1993_v34 = vrot.slane %v1992_v56, 4  ;;  %v2027_v6 = vsel %vm1977_vm15, %v1968_v55, 0.0  ;;  %v2357_v44 = vld [vmem:[#allocation2 + $0x80] sm:$0xff]  ;;  %v2439_v55 = vld [vmem:[#allocation2 + $0xb8] sm:$0xff] }
 0x333   : > { %v1999_v43 = vsel %vm1977_vm15, %v1951_v35, 0.0  ;;  %v2015_v63 = vadd.f32 %v2014_v27, %v2013_v23  ;;  %v2008_v45 = vadd.f32 %v2007_v61, %v2006_v1  ;;  %v2028_v28 = vrot.slane %v2027_v6, 4  ;;  %v2595_v61 = vld [vmem:[#allocation2 + $0xe8] sm:$0xff] }
 0x334   : > { %v1981_v31 = vrot.slane %v1980_v13, 2  ;;  %v1987_v51 = vadd.f32 %v1986_v47, %v1985_v60  ;;  %v1994_v21 = vadd.f32 %v1993_v34, %v1992_v56  ;;  %v2000_v15 = vrot.slane %v1999_v43, 4  ;;  %v2358_v60 = vld [vmem:[#allocation2 + $0x88] sm:$0xff]  ;;  %v2438_v56 = vld [vmem:[#allocation2 + $0xb0] sm:$0xff] }
 0x335   : > { %v2016_v46 = vrot.slane %v2015_v63, 2  ;;  %v2009_v37 = vrot.slane %v2008_v45, 2  ;;  %v2021_v29 = vrot.slane %v2020_v2, 4  ;;  %v2029_v26 = vadd.f32 %v2028_v28, %v2027_v6  ;;  %v2359_v47 = vld [vmem:[#allocation2 + $0x90] sm:$0xff]  ;;  %v2518_v28 = vld [vmem:[#allocation2 + $0xd8] sm:$0xff] }
 0x336   : > { %v1982_v18 = vadd.f32 %v1981_v31, %v1980_v13  ;;  %v1988_v36 = vrot.slane %v1987_v51, 2  ;;  %v1995_v39 = vrot.slane %v1994_v21, 2  ;;  %v2001_v9 = vadd.f32 %v2000_v15, %v1999_v43  ;;  %v2594_v15 = vld [vmem:[#allocation2 + $0xe0] sm:$0xff] }
 0x337   : > { %v2017_v4 = vadd.f32 %v2016_v46, %v2015_v63  ;;  %v3036_v8 = vpack.c.bf16 %v2202_v49, %v2201_v62  ;;  %v2010_v10 = vadd.f32 %v2009_v37, %v2008_v45  ;;  %v2022_v0 = vadd.f32 %v2021_v29, %v2020_v2  ;;  %v2517_v2 = vld [vmem:[#allocation2 + $0xd0] sm:$0xff] }
 0x338   : > { %v1983_v24 = vrot.slane %v1982_v18, 1  ;;  %v1989_v7 = vadd.f32 %v1988_v36, %v1987_v51  ;;  %v2002_v22 = vrot.slane %v2001_v9, 2  ;;  %v1996_v5 = vadd.f32 %v1995_v39, %v1994_v21  ;;  %v2360_v21 = vld [vmem:[#allocation2 + $0x98] sm:$0xff] }
 0x339   : > { %v3051_v54 = vpack.c.bf16 %v2437_v19, %v2436_v42  ;;  %v2018_v23 = vrot.slane %v2017_v4, 1  ;;  %v2030_v57 = vrot.slane %v2029_v26, 2  ;;  %v2023_v1 = vrot.slane %v2022_v0, 2 }
 0x33a   : > { %v1984_v41 = vadd.f32 %v1983_v24, %v1982_v18  ;;  %v1990_v14 = vrot.slane %v1989_v7, 1  ;;  %v2003_v58 = vadd.f32 %v2002_v22, %v2001_v9  ;;  %v1997_v25 = vrot.slane %v1996_v5, 1  ;;  %v2516_v9 = vld [vmem:[#allocation2 + $0xc8] sm:$0xff] }
 0x33b   : > { %v3045_v27 = vpack.c.bf16 %v2358_v60, %v2357_v44  ;;  %v3054_v31 = vpack.c.bf16 %v2439_v55, %v2438_v56  ;;  %v2011_v34 = vrot.slane %v2010_v10, 1  ;;  %v2019_v43 = vadd.f32 %v2018_v23, %v2017_v4 }
 0x33c   : > { %v2034_v12 = vmul.f32 0.5, %v1984_v41  ;;  %v1991_v30 = vadd.f32 %v1990_v14, %v1989_v7  ;;  %v2004_v38 = vrot.slane %v2003_v58, 1  ;;  %v1998_v35 = vadd.f32 %v1997_v25, %v1996_v5  ;;  %v2596_v41 = vld [vmem:[#allocation2 + $0xf0] sm:$0xff]  ;;  %v2597_v7 = vld [vmem:[#allocation2 + $0xf8] sm:$0xff] }
 0x33d   : > { %v2031_v18 = vadd.f32 %v2030_v57, %v2029_v26  ;;  %v3048_v63 = vpack.c.bf16 %v2360_v21, %v2359_v47  ;;  %v3063_v6 = vpack.c.bf16 %v2595_v61, %v2594_v15  ;;  %v2012_v32 = vadd.f32 %v2011_v34, %v2010_v10 }
 0x33e   : > { %2940 = vmatmul.mubr.msk.f32.vlgmr.msra.gmra.mrb[4].mxu0 %vm2051_vm0, %v2034_v12  ;;  %v2035_v53 = vmul.f32 0.5, %v1991_v30  ;;  %v2005_v33 = vadd.f32 %v2004_v38, %v2003_v58  ;;  %v2036_v51 = vmul.f32 0.5, %v1998_v35  ;;  %v2024_v24 = vadd.f32 %v2023_v1, %v2022_v0  ;;  %v2672_v0 = vld [vmem:[%s3946_s8] sm:$0x1] }
 0x33f   : > { %3040 = vmatpush3.bf16.msra.mxu0 %v3039_v17  ;;  %2961 = vmatprep.mubr.msk.f32.mxu0 %vm3243_vm14, %v3244_v3  ;;  %v2032_v36 = vrot.slane %v2031_v18, 1  ;;  %v2039_v39 = vmul.f32 0.5, %v2019_v43  ;;  %v3057_v22 = vpack.c.bf16 %v2516_v9, %v2515_v16  ;;  %v3066_v17 = vpack.c.bf16 %v2597_v7, %v2596_v41 }
 0x340   : > { %3041 = vmatprep.subr.bf16.mxu0 %v3242_v59  ;;  %2929 = vmatmul.mubr.msk.f32.vlgmr.msra.gmra.mrb[4].mxu1 %vm2051_vm0, %v2035_v53  ;;  %v2037_v13 = vmul.f32 0.5, %v2005_v33  ;;  %v2025_v45 = vrot.slane %v2024_v24, 1  ;;  %v2038_v46 = vmul.f32 0.5, %v2012_v32  ;;  %v3060_v48 = vpack.c.bf16 %v2518_v28, %v2517_v2 }
 0x341   : > { %3034 = vmatpush3.bf16.msra.mxu1 %v3033_v11  ;;  %2950 = vmatprep.mubr.msk.f32.mxu1 %vm3243_vm14, %v3244_v3  ;;  %v2033_v50 = vadd.f32 %v2032_v36, %v2031_v18 }
 0x342   : > { %3035 = vmatprep.subr.bf16.mxu1 %v3242_v59  ;;  %v2026_v14 = vadd.f32 %v2025_v45, %v2024_v24 }
 0x343   : > { %3043 = vmatpush3.bf16.msra.mxu0 %v3042_v40  ;;  %v2041_v5 = vmul.f32 0.5, %v2033_v50 }
 0x344   : > { %3050 = vmatprep.subr.bf16.mxu0 %v3242_v59  ;;  %v2040_v58 = vmul.f32 0.5, %v2026_v14 }
 0x345   : > { %3037 = vmatpush3.bf16.msra.mxu1 %v3036_v8 }
 0x346   : > { %2962 = vmatmul.mubr.msk.f32.vlgmr.msra.gmra.mrb[6].mxu0 %vm2051_vm0, %v2037_v13  ;;  %3044 = vmatprep.subr.bf16.mxu1 %v3242_v59 }
 0x347   : > { %3052 = vmatpush3.bf16.msra.mxu0 %v3051_v54  ;;  %2983 = vmatprep.mubr.msk.f32.mxu0 %vm3243_vm14, %v3244_v3 }
 0x348   : > { %3053 = vmatprep.subr.bf16.mxu0 %v3242_v59  ;;  %2951 = vmatmul.mubr.msk.f32.vlgmr.msra.gmra.mrb[6].mxu1 %vm2051_vm0, %v2036_v51 }
 0x349   : > { %3046 = vmatpush3.bf16.msra.mxu1 %v3045_v27  ;;  %2972 = vmatprep.mubr.msk.f32.mxu1 %vm3243_vm14, %v3244_v3 }
 0x34a   : > { %3047 = vmatprep.subr.bf16.mxu1 %v3242_v59 }
 0x34b   : > { %3055 = vmatpush3.bf16.msra.mxu0 %v3054_v31 }
 0x34c   : > { %3062 = vmatprep.subr.bf16.mxu0 %v3242_v59 }
 0x34d   : > { %3049 = vmatpush3.bf16.msra.mxu1 %v3048_v63 }
 0x34e   : > { %2984 = vmatmul.mubr.msk.f32.vlgmr.msra.gmra.mrb[8].mxu0 %vm2051_vm0, %v2039_v39  ;;  %3056 = vmatprep.subr.bf16.mxu1 %v3242_v59 }
 0x34f   : > { %3064 = vmatpush3.bf16.msra.mxu0 %v3063_v6  ;;  %3005 = vmatprep.mubr.msk.f32.mxu0 %vm3243_vm14, %v3244_v3 }
 0x350   : > { %3065 = vmatprep.subr.bf16.mxu0 %v3242_v59  ;;  %2973 = vmatmul.mubr.msk.f32.vlgmr.msra.gmra.mrb[8].mxu1 %vm2051_vm0, %v2038_v46 }
 0x351   : > { %3058 = vmatpush3.bf16.msra.mxu1 %v3057_v22  ;;  %2994 = vmatprep.mubr.msk.f32.mxu1 %vm3243_vm14, %v3244_v3 }
 0x352   : > { %3059 = vmatprep.subr.bf16.mxu1 %v3242_v59 }
 0x353   : > { %3067 = vmatpush3.bf16.msra.mxu0 %v3066_v17 }
 0x355   : > { %3061 = vmatpush3.bf16.msra.mxu1 %v3060_v48 }
 0x356   : > { %3006 = vmatmul.mubr.msk.f32.vlgmr.msra.gmra.mrb[10].mxu0 %vm2051_vm0, %v2041_v5 }
 0x358   : > { %2995 = vmatmul.mubr.msk.f32.vlgmr.msra.gmra.mrb[10].mxu1 %vm2051_vm0, %v2040_v58 }
 0x411   : > { %v2194_v12 = vpop.f32.mrb[4].mxu0 }
 0x412   : > { %v2941_v52 = vpop.f32.mrb[5].mxu0 }
 0x413   : > { %v2121_v20 = vpop.f32.mrb[4].mxu1 }
 0x414   : > { %v2195_v30 = vadd.f32 %v2194_v12, %v2121_v20  ;;  %v2930_v38 = vpop.f32.mrb[5].mxu1 }
 0x419   : > { %v2351_v11 = vpop.f32.mrb[6].mxu0 }
 0x41a   : > { %v2963_v37 = vpop.f32.mrb[7].mxu0 }
 0x41b   : > { %v2272_v29 = vpop.f32.mrb[6].mxu1 }
 0x41c   : > { %v2276_v59 = vadd.f32 %v2272_v29, %v2195_v30  ;;  %v2952_v26 = vpop.f32.mrb[7].mxu1 }
 0x41e   : > { %v2355_v40 = vadd.f32 %v2351_v11, %v2276_v59 }
 0x421   : > { %v2509_v3 = vpop.f32.mrb[8].mxu0 }
 0x422   : > { %v2985_v62 = vpop.f32.mrb[9].mxu0 }
 0x423   : > { %v2430_v49 = vpop.f32.mrb[8].mxu1 }
 0x424   : > { %v2434_v4 = vadd.f32 %v2430_v49, %v2355_v40  ;;  %v2974_v25 = vpop.f32.mrb[9].mxu1 }
 0x426   : > { %v2513_v53 = vadd.f32 %v2509_v3, %v2434_v4 }
 0x429   : > { %v2667_v33 = vpop.f32.mrb[10].mxu0 }
 0x42a   : > { %v3007_v42 = vpop.f32.mrb[11].mxu0 }
 0x42b   : > { %v2588_v19 = vpop.f32.mrb[10].mxu1 }
 0x42c   : > { %v2592_v8 = vadd.f32 %v2588_v19, %v2513_v53  ;;  %v2996_v10 = vpop.f32.mrb[11].mxu1 }
 0x42e   : > { %v2671_v54 = vadd.f32 %v2667_v33, %v2592_v8 }
 0x430   : > { %v2673_v44 = vadd.f32 %v2672_v0, %v2671_v54 }
 0x432   : > { %2675 = vst.msk [vmem:[%s339_s14] sm:$0x1] %vm2674_vm1, %v2673_v44 }
 0x433   : > { %3182 = shalt.err (!%p3179_p7)
}
 0x434   : > { %s3183_s28 = scalar_lea.hbm %s3896_s17, 16  ;;  %s3187_s14 = scalar_lea.hbm %s3947_s9, 32 }
 0x435   : > { %p3184_p8 = scmp.ne.s32.totalorder %s3896_s17, %s3183_s28  ;;  %p3188_p1 = scmp.lt.u32.totalorder %s3896_s17, %s3947_s9 }
 0x436   : > { %p3189_p0 = scmp.lt.u32.totalorder %s3187_s14, %s3183_s28  ;;  %p3191_p6 = scmp.lt.u32.totalorder %s3183_s28, %s3896_s17 }
 0x437   : > { %p3185_p11 = pnand %p3184_p8, %p3958_p9 }
 0x438   : > { %p3190_p5 = por %p3189_p0, %p3188_p1 }
 0x439   : > { %p3186_p13 = pneg %p3185_p11 }
 0x43a   : > { %p3192_p10 = por %p3191_p6, %p3190_p5 }
 0x43c   : > { %p3193_p12 = pnand %p3192_p10, %p3186_p13 }
 0x43e   : > { %3196 = shalt.err (!%p3193_p12)
}
 0x43f   : > { %3086 = dma.vmem_to_hbm [thread:$0]  (%p3958_p9), %s3898_s23, 16, %s3896_s17, %s2677_s22  }
 0x440 PF: > { %p3098_p2 = scmp.ge.s32.totalorder %s3235_s12, 2  ;;  %s2701_s25 = sand.u32 1, %s3223_s30  }
 0x441   : > { %p3959_p3 = scmp.ne.s32.totalorder %s3952_s20, 0  ;;  %s2702_s13 = scalar_lea.sflag [#allocation4], %s2701_s25 }
 0x443   : > { %p3093_p4 = pnand %p3098_p2, %p3959_p3 }
 0x445   : > { %3218 = dma.done.wait (!%p3093_p4), %s2702_s13, 16  }
 0x446   : > { %3220 = vsyncadd (!%p3093_p4), %s2702_s13, 4294967280  ;;  %p20_p7 = scmp.ge.s32.totalorder %s3321_s15, 4   ;;  %s3960_s30 = smov %s3227_s10 }
 0x447   : > { %s3961_s10 = smov %s3231_s11  ;;  %s3962_s11 = smov %s3332_s18 }
 0x448   : > { %s3963_s12 = smov %s3321_s15  ;;  %22 = sbr.rel (!%p20_p7) target bundleno = 4 (0x4), region = 109 }
 0x44f   :  { %2706 = vsyncpa [#allocation3], 1 }
 0x450   :  { %2708 = vsyncpa [#allocation3 + $0x1], 1 }
 0x451   :  { %2709 = vsyncpa [#allocation4], 1 }
 0x452   :  { %2711 = vsyncpa [#allocation4 + $0x1], 1 }

</bundles_post_ra>
